<compile_context>
chip_gen: v7x
topology: tpu7x:2x2x1
jax: 0.10.0
libtpu: 0.0.40
codegen_flags: <defaults>
</compile_context>

<pallas_src>
import math
import numpy as np
import jax
import jax.numpy as jnp
from jax.experimental import pallas as pl
from jax.experimental.pallas import tpu as pltpu

NUM_NODE = 115
BN_EPS = 1e-5

ROW_BLOCK_NT_CAP = 32   # kernel 1: NT rows per block (block rows = cap * V)
NT_BLOCK_CAP = 64       # kernels 2/3: NT rows per block


# ---------------------------------------------------------------------------
# Host-side shift-index construction: faithful port of the PyTorch
# `inner_shift` (module default shift_method='inner').  Runs once on the host.
# ---------------------------------------------------------------------------
def inner_shift(A, graph_group, node_num, channels, weight):
    index_array = np.arange(0, node_num * channels)
    index_array = index_array.reshape(node_num, channels)
    index_array_copy = np.copy(index_array)
    for grp in graph_group:
        lower_bound = int(np.min(grp))
        upper_bound = int(np.max(grp)) + 1
        for i in range(lower_bound, upper_bound):
            current_A = A[i].copy()
            current_A[i] = 0
            neighbors = np.nonzero(current_A)[0]
            j = 0
            counter_i = i - lower_bound + 1
            while j < channels:
                next_node = counter_i % (upper_bound - lower_bound) + lower_bound
                if j < weight:
                    j += weight
                elif next_node == i:
                    j += weight
                    counter_i += 1
                elif next_node in neighbors:
                    index_array[i][j:j + weight] = index_array_copy[next_node][j:j + weight]
                    j += weight
                    counter_i += 1
                else:
                    index_array[i][j] = index_array_copy[next_node][j]
                    j += 1
                    counter_i += 1
    return index_array.flatten()


# ---------------------------------------------------------------------------
# `down` residual branch (only active when in_channels != out_channels):
# 1x1 Conv2d + BatchNorm2d (training-mode stats) with the affine included.
# TODO(synk): kept in plain JAX; not exercised by the demo below (C == D).
# ---------------------------------------------------------------------------
def down_branch(x0, conv_w, conv_b, bn_gamma, bn_beta):
    y = jnp.einsum('nctv,dc->ndtv', x0, conv_w) + conv_b[None, :, None, None]
    mean = jnp.mean(y, axis=(0, 2, 3), keepdims=True)
    var = jnp.mean(jnp.square(y - mean), axis=(0, 2, 3), keepdims=True)
    yn = (y - mean) * jax.lax.rsqrt(var + BN_EPS)
    return yn * bn_gamma[None, :, None, None] + bn_beta[None, :, None, None]


# ---------------------------------------------------------------------------
# Helpers
# ---------------------------------------------------------------------------
def _pick_block(n, cap):
    """Largest multiple-of-8 divisor of n that is <= cap; falls back to n
    (a single full-extent block is always a legal BlockSpec)."""
    best = n
    for d in range(8, min(n, cap) + 1, 8):
        if n % d == 0:
            best = d
    return best


# ---------------------------------------------------------------------------
# Kernel 1: mask * x  ->  bf16 MXU matmul with the shared per-node weight
#   x  : (NT*V, C) f32 (already shift_in-gathered),  rows ordered (nt, v)
#   W  : (C, D) bf16,  bias: (1, D) f32,  mask tile: (RB, C) f32 (resident)
#   y  : (NT*V, D) f32
# ---------------------------------------------------------------------------
def _matmul_pallas(xg, w_bf16, bias, mask_vc, rb_nt, V):
    NTV, C = xg.shape
    D = w_bf16.shape[1]
    RB = rb_nt * V
    grid = (NTV // RB,)
    mask_t = jnp.tile(mask_vc, (rb_nt, 1))               # (RB, C), stays VMEM-resident

    def kernel(x_ref, w_ref, b_ref, m_ref, y_ref):
        xb = (x_ref[...] * m_ref[...]).astype(jnp.bfloat16)
        acc = jnp.dot(xb, w_ref[...], preferred_element_type=jnp.float32)
        y_ref[...] = acc + b_ref[...]

    return pl.pallas_call(
        kernel,
        out_shape=jax.ShapeDtypeStruct((NTV, D), jnp.float32),
        grid=grid,
        in_specs=[
            pl.BlockSpec((RB, C), lambda i: (i, 0)),
            pl.BlockSpec((C, D), lambda i: (0, 0)),
            pl.BlockSpec((1, D), lambda i: (0, 0)),
            pl.BlockSpec((RB, C), lambda i: (0, 0)),
        ],
        out_specs=pl.BlockSpec((RB, D), lambda i: (i, 0)),
        compiler_params=pltpu.CompilerParams(dimension_semantics=("parallel",)),
    )(xg, w_bf16, bias, mask_t)


# ---------------------------------------------------------------------------
# Kernel 2: BN stats pass.  Accumulates per-column sum / sum-of-squares in VMEM
# scratch over NT blocks and finalizes (pl.when on the last block) into a fused
# per-column scale/shift.
# ---------------------------------------------------------------------------
def _bn_stats_pallas(yg, gamma_pad, beta_pad, tm):
    NT, Fpad = yg.shape
    grid = (NT // tm,)
    inv_n = 1.0 / float(NT)

    def kernel(y_ref, g_ref, b_ref, scale_ref, shift_ref, s_ref, q_ref):
        i = pl.program_id(0)

        @pl.when(i == 0)
        def _():
            s_ref[...] = jnp.zeros_like(s_ref)
            q_ref[...] = jnp.zeros_like(q_ref)

        yb = y_ref[...]
        s_ref[...] += jnp.sum(yb, axis=0, keepdims=True)
        q_ref[...] += jnp.sum(yb * yb, axis=0, keepdims=True)

        @pl.when(i == pl.num_programs(0) - 1)
        def _():
            mean = s_ref[...] * inv_n
            var = q_ref[...] * inv_n - mean * mean
            sc = g_ref[...] * jax.lax.rsqrt(var + BN_EPS)
            scale_ref[...] = sc
            shift_ref[...] = b_ref[...] - mean * sc

    return pl.pallas_call(
        kernel,
        out_shape=(jax.ShapeDtypeStruct((1, Fpad), jnp.float32),
                   jax.ShapeDtypeStruct((1, Fpad), jnp.float32)),
        grid=grid,
        in_specs=[
            pl.BlockSpec((tm, Fpad), lambda i: (i, 0)),
            pl.BlockSpec((1, Fpad), lambda i: (0, 0)),
            pl.BlockSpec((1, Fpad), lambda i: (0, 0)),
        ],
        out_specs=(pl.BlockSpec((1, Fpad), lambda i: (0, 0)),
                   pl.BlockSpec((1, Fpad), lambda i: (0, 0))),
        scratch_shapes=[pltpu.VMEM((1, Fpad), jnp.float32),
                        pltpu.VMEM((1, Fpad), jnp.float32)],
        compiler_params=pltpu.CompilerParams(dimension_semantics=("arbitrary",)),
    )(yg, gamma_pad, beta_pad)


# ---------------------------------------------------------------------------
# Kernel 3: normalize + residual + ReLU apply pass (lane-dense, "parallel").
# ---------------------------------------------------------------------------
def _bn_apply_pallas(yg, res_pad, scale, shift, tm):
    NT, Fpad = yg.shape
    grid = (NT // tm,)

    def kernel(y_ref, r_ref, sc_ref, sh_ref, o_ref):
        o_ref[...] = jnp.maximum(
            y_ref[...] * sc_ref[...] + sh_ref[...] + r_ref[...], 0.0)

    return pl.pallas_call(
        kernel,
        out_shape=jax.ShapeDtypeStruct((NT, Fpad), jnp.float32),
        grid=grid,
        in_specs=[
            pl.BlockSpec((tm, Fpad), lambda i: (i, 0)),
            pl.BlockSpec((tm, Fpad), lambda i: (i, 0)),
            pl.BlockSpec((1, Fpad), lambda i: (0, 0)),
            pl.BlockSpec((1, Fpad), lambda i: (0, 0)),
        ],
        out_specs=pl.BlockSpec((tm, Fpad), lambda i: (i, 0)),
        compiler_params=pltpu.CompilerParams(dimension_semantics=("parallel",)),
    )(yg, res_pad, scale, shift)


# ---------------------------------------------------------------------------
# Parameter preparation (once, outside the jitted forward).
# ---------------------------------------------------------------------------
def prepare_params(params, num_node):
    V = num_node
    W = params["W"]
    C, D = W.shape
    VD = V * D
    Fpad = ((VD + 127) // 128) * 128
    shift_out_pad = jnp.concatenate(
        [params["shift_out"], jnp.zeros((Fpad - VD,), jnp.int32)])
    prep = {
        "W_bf16": W.astype(jnp.bfloat16),
        "bias": params["b"].reshape(1, D).astype(jnp.float32),
        "mask_vc": (jnp.tanh(params["feature_mask"]) + 1.0).reshape(V, C),
        "shift_in": params["shift_in"],
        "shift_out_pad": shift_out_pad,
        "gamma_pad": jnp.pad(params["bn_gamma"], (0, Fpad - VD)).reshape(1, Fpad),
        "beta_pad": jnp.pad(params["bn_beta"], (0, Fpad - VD)).reshape(1, Fpad),
    }
    if "down_w" in params:
        prep["down_w"] = params["down_w"]
        prep["down_b"] = params["down_b"]
        prep["down_gamma"] = params["down_gamma"]
        prep["down_beta"] = params["down_beta"]
    return prep


# ---------------------------------------------------------------------------
# Full forward (jit this).  All static sizes are derived from array shapes.
# ---------------------------------------------------------------------------
def shift_gcn_forward(x0, prep):
    N, C, T, V = x0.shape
    D = prep["W_bf16"].shape[1]
    Fpad = prep["gamma_pad"].shape[1]
    VD = V * D
    NT = N * T

    # Layout glue + static shift_in gather (XLA): (N,C,T,V) -> (NT, V*C) -> gather.
    x_perm = jnp.transpose(x0, (0, 2, 3, 1)).reshape(NT, V * C)
    x_in = jnp.take(x_perm, prep["shift_in"], axis=1)          # (NT, V*C)
    xg = x_in.reshape(NT * V, C)                               # free reshape

    # Kernel 1: mask + block-diagonal (per-node) Linear as one bf16 MXU matmul.
    rb_nt = _pick_block(NT, ROW_BLOCK_NT_CAP)
    y = _matmul_pallas(xg, prep["W_bf16"], prep["bias"], prep["mask_vc"], rb_nt, V)

    # Static shift_out gather + pad to the lane-dense width (XLA gather).
    yg = jnp.take(y.reshape(NT, VD), prep["shift_out_pad"], axis=1)   # (NT, Fpad)

    # Residual: when C == D it IS the transposed input -> no duplicate copy,
    # just zero-pad to the lane-dense width (free if the padded layout is kept
    # between layers in a full network).
    if C == D:
        res_pad = jnp.pad(x_perm, ((0, 0), (0, Fpad - VD)))
    else:
        r = down_branch(x0, prep["down_w"], prep["down_b"],
                        prep["down_gamma"], prep["down_beta"])
        res_pad = jnp.pad(jnp.transpose(r, (0, 2, 3, 1)).reshape(NT, VD),
                          ((0, 0), (0, Fpad - VD)))

    # Kernels 2 + 3: two-pass BatchNorm1d (batch stats) + residual + ReLU.
    tm = _pick_block(NT, NT_BLOCK_CAP)
    scale, shift = _bn_stats_pallas(yg, prep["gamma_pad"], prep["beta_pad"], tm)
    out_pad = _bn_apply_pallas(yg, res_pad, scale, shift, tm)

    # Back to (N, D, T, V).
    return out_pad[:, :VD].reshape(N, T, V, D).transpose(0, 3, 1, 2)


# ---------------------------------------------------------------------------
# Parameter construction — mirrors the PyTorch __init__ (deterministic).
# ---------------------------------------------------------------------------
def make_params(key, in_channels, out_channels, A_np, graph_group, weight=2):
    A = np.sum(A_np, 0)
    A[A == 0] = 0
    A[A != 0] = 1
    V = A.shape[0]
    shift_in = inner_shift(A, graph_group, V, in_channels, weight)
    shift_out = inner_shift(A, graph_group, V, out_channels, weight)

    kW, kC = jax.random.split(key)
    W = jax.random.normal(kW, (in_channels, out_channels), jnp.float32) \
        * math.sqrt(1.0 / out_channels)                               # normal_(0, sqrt(1/D))
    params = {
        "W": W,
        "b": jnp.zeros((out_channels,), jnp.float32),                 # Linear_bias = 0
        "feature_mask": jnp.zeros((1, V, in_channels), jnp.float32),  # Feature_Mask = 0
        "bn_gamma": jnp.ones((V * out_channels,), jnp.float32),       # BatchNorm1d defaults
        "bn_beta": jnp.zeros((V * out_channels,), jnp.float32),
        "shift_in": jnp.asarray(shift_in, jnp.int32),
        "shift_out": jnp.asarray(shift_out, jnp.int32),
    }
    if in_channels != out_channels:
        # kaiming_normal fan_out for a 1x1 conv: std = sqrt(2 / out_channels)
        params["down_w"] = jax.random.normal(kC, (out_channels, in_channels), jnp.float32) \
            * math.sqrt(2.0 / out_channels)
        params["down_b"] = jnp.zeros((out_channels,), jnp.float32)
        params["down_gamma"] = jnp.ones((out_channels,), jnp.float32)
        params["down_beta"] = jnp.zeros((out_channels,), jnp.float32)
    return params


# ---------------------------------------------------------------------------
# Pure-JAX f32 reference (mirrors the PyTorch forward op-by-op) — sanity check.
# ---------------------------------------------------------------------------
def reference_forward(x0, params):
    N, C, T, V = x0.shape
    D = params["W"].shape[1]
    NT = N * T
    x = jnp.transpose(x0, (0, 2, 3, 1)).reshape(NT, V * C)
    x = x[:, params["shift_in"]]
    x = x.reshape(NT, V, C)
    x = x * (jnp.tanh(params["feature_mask"]) + 1.0)
    y = jnp.einsum('nwc,cd->nwd', x, params["W"],
                   precision=jax.lax.Precision.HIGHEST)
    y = y + params["b"].reshape(1, 1, D)
    y = y.reshape(NT, V * D)
    y = y[:, params["shift_out"]]
    mean = jnp.mean(y, axis=0, keepdims=True)
    var = jnp.mean(jnp.square(y - mean), axis=0, keepdims=True)
    y = (y - mean) * jax.lax.rsqrt(var + BN_EPS) * params["bn_gamma"] + params["bn_beta"]
    y = y.reshape(N, T, V, D).transpose(0, 3, 1, 2)
    if C == D:
        res = x0
    else:
        res = down_branch(x0, params["down_w"], params["down_b"],
                          params["down_gamma"], params["down_beta"])
    return jnp.maximum(y + res, 0.0)


if __name__ == "__main__":
    # Small shapes consistent with the module: V fixed at num_node = 115.
    N, C, T = 2, 4, 64
    D = 4                       # out_channels == in_channels -> identity `down`
    V = NUM_NODE
    weight = 2                  # module default

    # Deterministic adjacency: 3 identical subsets, each node connected to
    # itself and its successor on a ring.
    A_np = np.zeros((3, V, V), dtype=np.float64)
    for s in range(3):
        for i in range(V):
            A_np[s, i, i] = 1.0
            A_np[s, i, (i + 1) % V] = 1.0
    # 5 contiguous node groups of 23 (graph_group as used by inner_shift).
    graph_group = [list(range(g * 23, (g + 1) * 23)) for g in range(5)]

    key = jax.random.PRNGKey(0)
    k_x, k_p = jax.random.split(key)
    x0 = jax.random.normal(k_x, (N, C, T, V), jnp.float32)

    params = make_params(k_p, C, D, A_np, graph_group, weight)
    prep = prepare_params(params, V)

    fwd = jax.jit(shift_gcn_forward)
    out = fwd(x0, prep)
    jax.block_until_ready(out)
    assert out.shape == (N, D, T, V)

    # Sanity check against the op-by-op f32 reference of the PyTorch forward
    # (tolerance accounts for the bf16 MXU inputs).
    ref = reference_forward(x0, params)
    np.testing.assert_allclose(np.asarray(out), np.asarray(ref), rtol=2e-2, atol=2e-2)

    print("KERNEL_OK")
</pallas_src>

<mosaic_0001>
module attributes {stable_mosaic.version = 11 : i64} {
  func.func @kernel(%arg0: i32, %arg1: memref<3680x4xf32, #tpu.memory_space<vmem>>, %arg2: memref<4x4xbf16, #tpu.memory_space<vmem>>, %arg3: memref<1x4xf32, #tpu.memory_space<vmem>>, %arg4: memref<3680x4xf32, #tpu.memory_space<vmem>>, %arg5: memref<3680x4xf32, #tpu.memory_space<vmem>>) attributes {dimension_semantics = [#tpu.dimension_semantics<parallel>], iteration_bounds = array<i64: 4>, scalar_prefetch = 0 : i64, scratch_operands = 0 : i64, tpu.core_type = #tpu.core_type<tc>, window_params = [{transform_indices = @transform_0, window_bounds = array<i64: 3680, 4>}, {pipeline_mode = #tpu.pipeline_mode<synchronous>, transform_indices = @transform_1, window_bounds = array<i64: 4, 4>}, {pipeline_mode = #tpu.pipeline_mode<synchronous>, transform_indices = @transform_2, window_bounds = array<i64: 1, 4>}, {pipeline_mode = #tpu.pipeline_mode<synchronous>, transform_indices = @transform_3, window_bounds = array<i64: 3680, 4>}, {transform_indices = @transform_4, window_bounds = array<i64: 3680, 4>}]} {
    %c0 = arith.constant 0 : index
    %c0_0 = arith.constant 0 : index
    %0 = vector.load %arg1[%c0, %c0_0] : memref<3680x4xf32, #tpu.memory_space<vmem>>, vector<3680x4xf32>
    %c0_1 = arith.constant 0 : index
    %c0_2 = arith.constant 0 : index
    %1 = vector.load %arg4[%c0_1, %c0_2] : memref<3680x4xf32, #tpu.memory_space<vmem>>, vector<3680x4xf32>
    %2 = arith.mulf %0, %1 : vector<3680x4xf32>
    %3 = arith.truncf %2 : vector<3680x4xf32> to vector<3680x4xbf16>
    %c0_3 = arith.constant 0 : index
    %c0_4 = arith.constant 0 : index
    %4 = vector.load %arg2[%c0_3, %c0_4] : memref<4x4xbf16, #tpu.memory_space<vmem>>, vector<4x4xbf16>
    %cst = arith.constant dense<0.000000e+00> : vector<3680x4xf32>
    %5 = tpu.matmul %3, %4, %cst {dimension_numbers = #tpu.dot_dimension_numbers<[1], [0], [0], [1], [0, 0, 1, 1], [], []>} : vector<3680x4xbf16>, vector<4x4xbf16>, vector<3680x4xf32> -> vector<3680x4xf32>
    %c0_5 = arith.constant 0 : index
    %c0_6 = arith.constant 0 : index
    %6 = vector.load %arg3[%c0_5, %c0_6] : memref<1x4xf32, #tpu.memory_space<vmem>>, vector<1x4xf32>
    %7 = vector.broadcast %6 : vector<1x4xf32> to vector<3680x4xf32>
    %8 = arith.addf %5, %7 : vector<3680x4xf32>
    %c0_7 = arith.constant 0 : index
    %c0_8 = arith.constant 0 : index
    %9 = vector.load %arg5[%c0_7, %c0_8] : memref<3680x4xf32, #tpu.memory_space<vmem>>, vector<3680x4xf32>
    tpu.vector_store %arg5[%c0_7, %c0_8], %8 {strides = array<i32>} : memref<3680x4xf32, #tpu.memory_space<vmem>>, vector<3680x4xf32>,
    return
  }
  func.func @transform_0(%arg0: i32) -> (i32, i32) {
    %c0_i32 = arith.constant 0 : i32
    %c0_i32_0 = arith.constant 0 : i32
    return %arg0, %c0_i32 : i32, i32
  }
  func.func @transform_1(%arg0: i32) -> (i32, i32) {
    %c0_i32 = arith.constant 0 : i32
    %c0_i32_0 = arith.constant 0 : i32
    %c0_i32_1 = arith.constant 0 : i32
    return %c0_i32, %c0_i32_0 : i32, i32
  }
  func.func @transform_2(%arg0: i32) -> (i32, i32) {
    %c0_i32 = arith.constant 0 : i32
    %c0_i32_0 = arith.constant 0 : i32
    %c0_i32_1 = arith.constant 0 : i32
    return %c0_i32, %c0_i32_0 : i32, i32
  }
  func.func @transform_3(%arg0: i32) -> (i32, i32) {
    %c0_i32 = arith.constant 0 : i32
    %c0_i32_0 = arith.constant 0 : i32
    %c0_i32_1 = arith.constant 0 : i32
    return %c0_i32, %c0_i32_0 : i32, i32
  }
  func.func @transform_4(%arg0: i32) -> (i32, i32) {
    %c0_i32 = arith.constant 0 : i32
    %c0_i32_0 = arith.constant 0 : i32
    return %arg0, %c0_i32 : i32, i32
  }
}

module attributes {stable_mosaic.version = 11 : i64} {
  func.func @kernel(%arg0: i32, %arg1: memref<64x512xf32, #tpu.memory_space<vmem>>, %arg2: memref<1x512xf32, #tpu.memory_space<vmem>>, %arg3: memref<1x512xf32, #tpu.memory_space<vmem>>, %arg4: memref<1x512xf32, #tpu.memory_space<vmem>>, %arg5: memref<1x512xf32, #tpu.memory_space<vmem>>, %arg6: memref<1x512xf32, #tpu.memory_space<vmem>>, %arg7: memref<1x512xf32, #tpu.memory_space<vmem>>) attributes {dimension_semantics = [#tpu.dimension_semantics<arbitrary>], iteration_bounds = array<i64: 2>, scalar_prefetch = 0 : i64, scratch_operands = 2 : i64, tpu.core_type = #tpu.core_type<tc>, window_params = [{transform_indices = @transform_0, window_bounds = array<i64: 64, 512>}, {pipeline_mode = #tpu.pipeline_mode<synchronous>, transform_indices = @transform_1, window_bounds = array<i64: 1, 512>}, {pipeline_mode = #tpu.pipeline_mode<synchronous>, transform_indices = @transform_2, window_bounds = array<i64: 1, 512>}, {pipeline_mode = #tpu.pipeline_mode<synchronous>, transform_indices = @transform_3, window_bounds = array<i64: 1, 512>}, {pipeline_mode = #tpu.pipeline_mode<synchronous>, transform_indices = @transform_4, window_bounds = array<i64: 1, 512>}]} {
    %c0_i32 = arith.constant 0 : i32
    %0 = arith.cmpi eq, %arg0, %c0_i32 : i32
    %1 = arith.extui %0 : i1 to i32
    %c0_i32_0 = arith.constant 0 : i32
    %2 = arith.cmpi ne, %1, %c0_i32_0 : i32
    scf.if %2 {
      %cst_12 = arith.constant 0.000000e+00 : f32
      %18 = vector.broadcast %cst_12 : f32 to vector<1x512xf32>
      %c0_13 = arith.constant 0 : index
      %c0_14 = arith.constant 0 : index
      %19 = vector.load %arg6[%c0_13, %c0_14] : memref<1x512xf32, #tpu.memory_space<vmem>>, vector<1x512xf32>
      tpu.vector_store %arg6[%c0_13, %c0_14], %18 {strides = array<i32>} : memref<1x512xf32, #tpu.memory_space<vmem>>, vector<1x512xf32>,
      %cst_15 = arith.constant 0.000000e+00 : f32
      %20 = vector.broadcast %cst_15 : f32 to vector<1x512xf32>
      %c0_16 = arith.constant 0 : index
      %c0_17 = arith.constant 0 : index
      %21 = vector.load %arg7[%c0_16, %c0_17] : memref<1x512xf32, #tpu.memory_space<vmem>>, vector<1x512xf32>
      tpu.vector_store %arg7[%c0_16, %c0_17], %20 {strides = array<i32>} : memref<1x512xf32, #tpu.memory_space<vmem>>, vector<1x512xf32>,
    } else {
    }
    %c0 = arith.constant 0 : index
    %c0_1 = arith.constant 0 : index
    %3 = vector.load %arg1[%c0, %c0_1] : memref<64x512xf32, #tpu.memory_space<vmem>>, vector<64x512xf32>
    %c0_2 = arith.constant 0 : index
    %c0_3 = arith.constant 0 : index
    %4 = vector.load %arg6[%c0_2, %c0_3] : memref<1x512xf32, #tpu.memory_space<vmem>>, vector<1x512xf32>
    %cst = arith.constant dense<0.000000e+00> : vector<512xf32>
    %5 = vector.multi_reduction <add>, %3, %cst [0] : vector<64x512xf32> to vector<512xf32>
    %6 = vector.shape_cast %5 : vector<512xf32> to vector<1x512xf32>
    %7 = arith.addf %4, %6 : vector<1x512xf32>
    %c0_4 = arith.constant 0 : index
    %c0_5 = arith.constant 0 : index
    %8 = vector.load %arg6[%c0_4, %c0_5] : memref<1x512xf32, #tpu.memory_space<vmem>>, vector<1x512xf32>
    tpu.vector_store %arg6[%c0_4, %c0_5], %7 {strides = array<i32>} : memref<1x512xf32, #tpu.memory_space<vmem>>, vector<1x512xf32>,
    %c0_6 = arith.constant 0 : index
    %c0_7 = arith.constant 0 : index
    %9 = vector.load %arg7[%c0_6, %c0_7] : memref<1x512xf32, #tpu.memory_space<vmem>>, vector<1x512xf32>
    %10 = arith.mulf %3, %3 : vector<64x512xf32>
    %cst_8 = arith.constant dense<0.000000e+00> : vector<512xf32>
    %11 = vector.multi_reduction <add>, %10, %cst_8 [0] : vector<64x512xf32> to vector<512xf32>
    %12 = vector.shape_cast %11 : vector<512xf32> to vector<1x512xf32>
    %13 = arith.addf %9, %12 : vector<1x512xf32>
    %c0_9 = arith.constant 0 : index
    %c0_10 = arith.constant 0 : index
    %14 = vector.load %arg7[%c0_9, %c0_10] : memref<1x512xf32, #tpu.memory_space<vmem>>, vector<1x512xf32>
    tpu.vector_store %arg7[%c0_9, %c0_10], %13 {strides = array<i32>} : memref<1x512xf32, #tpu.memory_space<vmem>>, vector<1x512xf32>,
    %c1_i32 = arith.constant 1 : i32
    %15 = arith.cmpi eq, %arg0, %c1_i32 : i32
    %16 = arith.extui %15 : i1 to i32
    %c0_i32_11 = arith.constant 0 : i32
    %17 = arith.cmpi ne, %16, %c0_i32_11 : i32
    scf.if %17 {
      %c0_12 = arith.constant 0 : index
      %c0_13 = arith.constant 0 : index
      %18 = vector.load %arg6[%c0_12, %c0_13] : memref<1x512xf32, #tpu.memory_space<vmem>>, vector<1x512xf32>
      %cst_14 = arith.constant 7.812500e-03 : f32
      %19 = vector.broadcast %cst_14 : f32 to vector<1x512xf32>
      %20 = arith.mulf %18, %19 : vector<1x512xf32>
      %c0_15 = arith.constant 0 : index
      %c0_16 = arith.constant 0 : index
      %21 = vector.load %arg7[%c0_15, %c0_16] : memref<1x512xf32, #tpu.memory_space<vmem>>, vector<1x512xf32>
      %cst_17 = arith.constant 7.812500e-03 : f32
      %22 = vector.broadcast %cst_17 : f32 to vector<1x512xf32>
      %23 = arith.mulf %21, %22 : vector<1x512xf32>
      %24 = arith.mulf %20, %20 : vector<1x512xf32>
      %25 = arith.subf %23, %24 : vector<1x512xf32>
      %c0_18 = arith.constant 0 : index
      %c0_19 = arith.constant 0 : index
      %26 = vector.load %arg2[%c0_18, %c0_19] : memref<1x512xf32, #tpu.memory_space<vmem>>, vector<1x512xf32>
      %cst_20 = arith.constant 9.99999974E-6 : f32
      %27 = vector.broadcast %cst_20 : f32 to vector<1x512xf32>
      %28 = arith.addf %25, %27 : vector<1x512xf32>
      %29 = math.rsqrt %28 : vector<1x512xf32>
      %30 = arith.mulf %26, %29 : vector<1x512xf32>
      %c0_21 = arith.constant 0 : index
      %c0_22 = arith.constant 0 : index
      %31 = vector.load %arg4[%c0_21, %c0_22] : memref<1x512xf32, #tpu.memory_space<vmem>>, vector<1x512xf32>
      tpu.vector_store %arg4[%c0_21, %c0_22], %30 {strides = array<i32>} : memref<1x512xf32, #tpu.memory_space<vmem>>, vector<1x512xf32>,
      %c0_23 = arith.constant 0 : index
      %c0_24 = arith.constant 0 : index
      %32 = vector.load %arg3[%c0_23, %c0_24] : memref<1x512xf32, #tpu.memory_space<vmem>>, vector<1x512xf32>
      %33 = arith.mulf %20, %30 : vector<1x512xf32>
      %34 = arith.subf %32, %33 : vector<1x512xf32>
      %c0_25 = arith.constant 0 : index
      %c0_26 = arith.constant 0 : index
      %35 = vector.load %arg5[%c0_25, %c0_26] : memref<1x512xf32, #tpu.memory_space<vmem>>, vector<1x512xf32>
      tpu.vector_store %arg5[%c0_25, %c0_26], %34 {strides = array<i32>} : memref<1x512xf32, #tpu.memory_space<vmem>>, vector<1x512xf32>,
    } else {
    }
    return
  }
  func.func @transform_0(%arg0: i32) -> (i32, i32) {
    %c0_i32 = arith.constant 0 : i32
    %c0_i32_0 = arith.constant 0 : i32
    return %arg0, %c0_i32 : i32, i32
  }
  func.func @transform_1(%arg0: i32) -> (i32, i32) {
    %c0_i32 = arith.constant 0 : i32
    %c0_i32_0 = arith.constant 0 : i32
    %c0_i32_1 = arith.constant 0 : i32
    return %c0_i32, %c0_i32_0 : i32, i32
  }
  func.func @transform_2(%arg0: i32) -> (i32, i32) {
    %c0_i32 = arith.constant 0 : i32
    %c0_i32_0 = arith.constant 0 : i32
    %c0_i32_1 = arith.constant 0 : i32
    return %c0_i32, %c0_i32_0 : i32, i32
  }
  func.func @transform_3(%arg0: i32) -> (i32, i32) {
    %c0_i32 = arith.constant 0 : i32
    %c0_i32_0 = arith.constant 0 : i32
    %c0_i32_1 = arith.constant 0 : i32
    return %c0_i32, %c0_i32_0 : i32, i32
  }
  func.func @transform_4(%arg0: i32) -> (i32, i32) {
    %c0_i32 = arith.constant 0 : i32
    %c0_i32_0 = arith.constant 0 : i32
    %c0_i32_1 = arith.constant 0 : i32
    return %c0_i32, %c0_i32_0 : i32, i32
  }
}

module attributes {stable_mosaic.version = 11 : i64} {
  func.func @kernel(%arg0: i32, %arg1: memref<64x512xf32, #tpu.memory_space<vmem>>, %arg2: memref<64x512xf32, #tpu.memory_space<vmem>>, %arg3: memref<1x512xf32, #tpu.memory_space<vmem>>, %arg4: memref<1x512xf32, #tpu.memory_space<vmem>>, %arg5: memref<64x512xf32, #tpu.memory_space<vmem>>) attributes {dimension_semantics = [#tpu.dimension_semantics<parallel>], iteration_bounds = array<i64: 2>, scalar_prefetch = 0 : i64, scratch_operands = 0 : i64, tpu.core_type = #tpu.core_type<tc>, window_params = [{transform_indices = @transform_0, window_bounds = array<i64: 64, 512>}, {transform_indices = @transform_1, window_bounds = array<i64: 64, 512>}, {pipeline_mode = #tpu.pipeline_mode<synchronous>, transform_indices = @transform_2, window_bounds = array<i64: 1, 512>}, {pipeline_mode = #tpu.pipeline_mode<synchronous>, transform_indices = @transform_3, window_bounds = array<i64: 1, 512>}, {transform_indices = @transform_4, window_bounds = array<i64: 64, 512>}]} {
    %c0 = arith.constant 0 : index
    %c0_0 = arith.constant 0 : index
    %0 = vector.load %arg1[%c0, %c0_0] : memref<64x512xf32, #tpu.memory_space<vmem>>, vector<64x512xf32>
    %c0_1 = arith.constant 0 : index
    %c0_2 = arith.constant 0 : index
    %1 = vector.load %arg3[%c0_1, %c0_2] : memref<1x512xf32, #tpu.memory_space<vmem>>, vector<1x512xf32>
    %2 = vector.broadcast %1 : vector<1x512xf32> to vector<64x512xf32>
    %3 = arith.mulf %0, %2 : vector<64x512xf32>
    %c0_3 = arith.constant 0 : index
    %c0_4 = arith.constant 0 : index
    %4 = vector.load %arg4[%c0_3, %c0_4] : memref<1x512xf32, #tpu.memory_space<vmem>>, vector<1x512xf32>
    %5 = vector.broadcast %4 : vector<1x512xf32> to vector<64x512xf32>
    %6 = arith.addf %3, %5 : vector<64x512xf32>
    %c0_5 = arith.constant 0 : index
    %c0_6 = arith.constant 0 : index
    %7 = vector.load %arg2[%c0_5, %c0_6] : memref<64x512xf32, #tpu.memory_space<vmem>>, vector<64x512xf32>
    %8 = arith.addf %6, %7 : vector<64x512xf32>
    %cst = arith.constant 0.000000e+00 : f32
    %9 = vector.broadcast %cst : f32 to vector<64x512xf32>
    %10 = arith.maximumf %8, %9 : vector<64x512xf32>
    %c0_7 = arith.constant 0 : index
    %c0_8 = arith.constant 0 : index
    %11 = vector.load %arg5[%c0_7, %c0_8] : memref<64x512xf32, #tpu.memory_space<vmem>>, vector<64x512xf32>
    tpu.vector_store %arg5[%c0_7, %c0_8], %10 {strides = array<i32>} : memref<64x512xf32, #tpu.memory_space<vmem>>, vector<64x512xf32>,
    return
  }
  func.func @transform_0(%arg0: i32) -> (i32, i32) {
    %c0_i32 = arith.constant 0 : i32
    %c0_i32_0 = arith.constant 0 : i32
    return %arg0, %c0_i32 : i32, i32
  }
  func.func @transform_1(%arg0: i32) -> (i32, i32) {
    %c0_i32 = arith.constant 0 : i32
    %c0_i32_0 = arith.constant 0 : i32
    return %arg0, %c0_i32 : i32, i32
  }
  func.func @transform_2(%arg0: i32) -> (i32, i32) {
    %c0_i32 = arith.constant 0 : i32
    %c0_i32_0 = arith.constant 0 : i32
    %c0_i32_1 = arith.constant 0 : i32
    return %c0_i32, %c0_i32_0 : i32, i32
  }
  func.func @transform_3(%arg0: i32) -> (i32, i32) {
    %c0_i32 = arith.constant 0 : i32
    %c0_i32_0 = arith.constant 0 : i32
    %c0_i32_1 = arith.constant 0 : i32
    return %c0_i32, %c0_i32_0 : i32, i32
  }
  func.func @transform_4(%arg0: i32) -> (i32, i32) {
    %c0_i32 = arith.constant 0 : i32
    %c0_i32_0 = arith.constant 0 : i32
    return %arg0, %c0_i32 : i32, i32
  }
}

</mosaic_0001>

<bundles_post_ra>
// kernel: tile.9
= control target key start
LH: loop header
LB: loop body
LE: loop exit
PB: predicated region body
PF: predicated region fallthrough
CT: control target
= control target key end

     0   :  { %vm5_vm0 = vcmask 1041409   ;;  %vm9_vm1 = vcmask 1042434   ;;  %vm13_vm2 = vcmask 1043459   ;;  %vm45_vm3 = vcmask 15360   ;;  %s1635_s11 = smov 126   ;;  %s1636_s28 = smov 122   ;;  %s2691_s0 = inlined_call_operand.vmem [shape: f32[32,115,4], index: 0, kind: input, shape index: {}]   ;;  %s2692_s1 = inlined_call_operand.vmem [shape: f32[3680,4], index: 1, kind: output, shape index: {}]  }
   0x1   :  { %v1340_v0 = vld [vmem:[%s2691_s0 + $0xa] sm:$0x1]   ;;  %v1356_v11 = vld [vmem:[%s2691_s0 + $0x1e] sm:$0x1]   ;;  %vm121_vm4 = vcmask 48128   ;;  %vm83_vm5 = vcmask 31744  }
   0x2   :  { %v1341_v1 = vld [vmem:[%s2691_s0 + $0x29] sm:$0x2]   ;;  %v1357_v14 = vld [vmem:[%s2691_s0 + $0x3d] sm:$0x2]   ;;  %v1348_v26 = vld [vmem:[%s2691_s0 + $0x14] sm:$0x1]  }
   0x3   :  { %v1342_v2 = vld [vmem:[%s2691_s0 + $0x48] sm:$0x4]   ;;  %v22_v4 = vsel %vm5_vm0, %v1341_v1, %v1340_v0  ;;  %v1358_v15 = vld [vmem:[%s2691_s0 + $0x5c] sm:$0x4]   ;;  %v98_v18 = vsel %vm5_vm0, %v1357_v14, %v1356_v11  ;;  %v1349_v29 = vld [vmem:[%s2691_s0 + $0x33] sm:$0x2]  }
   0x4   :  { %v1343_v3 = vld [vmem:[%s2691_s0 + $0x67] sm:$0x8]   ;;  %v26_v8 = vsel %vm9_vm1, %v1342_v2, %v22_v4  ;;  %v1359_v16 = vld [vmem:[%s2691_s0 + $0x7b] sm:$0x8]   ;;  %v102_v23 = vsel %vm9_vm1, %v1358_v15, %v98_v18  ;;  %v1350_v30 = vld [vmem:[%s2691_s0 + $0x52] sm:$0x4]   ;;  %v60_v33 = vsel %vm5_vm0, %v1349_v29, %v1348_v26 }
   0x5   :  { %v1344_v5 = vld [vmem:[%s2691_s0 + $0xa] sm:$0x1]   ;;  %v30_v12 = vsel %vm13_vm2, %v1343_v3, %v26_v8  ;;  %v1360_v19 = vld [vmem:[%s2691_s0 + $0x1e] sm:$0x1]   ;;  %v106_v27 = vsel %vm13_vm2, %v1359_v16, %v102_v23  ;;  %v1351_v31 = vld [vmem:[%s2691_s0 + $0x71] sm:$0x8]   ;;  %v64_v38 = vsel %vm9_vm1, %v1350_v30, %v60_v33 }
   0x6   :  { %v1345_v6 = vld [vmem:[%s2691_s0 + $0x29] sm:$0x2]   ;;  %v1361_v20 = vld [vmem:[%s2691_s0 + $0x3d] sm:$0x2]   ;;  %v1352_v34 = vld [vmem:[%s2691_s0 + $0x14] sm:$0x1]   ;;  %v68_v42 = vsel %vm13_vm2, %v1351_v31, %v64_v38 }
   0x7   :  { %v1346_v7 = vld [vmem:[%s2691_s0 + $0x48] sm:$0x4]   ;;  %v36_v9 = vsel %vm5_vm0, %v1345_v6, %v1344_v5  ;;  %v1362_v21 = vld [vmem:[%s2691_s0 + $0x5c] sm:$0x4]   ;;  %v112_v24 = vsel %vm5_vm0, %v1361_v20, %v1360_v19  ;;  %v1353_v35 = vld [vmem:[%s2691_s0 + $0x33] sm:$0x2]  }
   0x8   :  { %v1347_v10 = vld [vmem:[%s2691_s0 + $0x67] sm:$0x8]   ;;  %v40_v13 = vsel %vm9_vm1, %v1346_v7, %v36_v9  ;;  %v1363_v25 = vld [vmem:[%s2691_s0 + $0x7b] sm:$0x8]   ;;  %v116_v28 = vsel %vm9_vm1, %v1362_v21, %v112_v24  ;;  %v1354_v36 = vld [vmem:[%s2691_s0 + $0x52] sm:$0x4]   ;;  %v74_v39 = vsel %vm5_vm0, %v1353_v35, %v1352_v34 }
   0x9   :  { %v44_v17 = vsel %vm13_vm2, %v1347_v10, %v40_v13  ;;  %v120_v32 = vsel %vm13_vm2, %v1363_v25, %v116_v28  ;;  %v1355_v40 = vld [vmem:[%s2691_s0 + $0x71] sm:$0x8]   ;;  %v1364_v41 = vld [vmem:[%s2691_s0 + $0x1] sm:$0x1]   ;;  %vm159_vm6 = vcmask 105472   ;;  %v78_v43 = vsel %vm9_vm1, %v1354_v36, %v74_v39  ;;  %s1637_s16 = smov 124  }
   0xa   :  { %v46_v22 = vsel %vm45_vm3, %v44_v17, %v30_v12  ;;  %v122_v37 = vsel %vm121_vm4, %v120_v32, %v106_v27  ;;  %v1365_v44 = vld [vmem:[%s2691_s0 + $0x20] sm:$0x2]   ;;  %v82_v47 = vsel %vm13_vm2, %v1355_v40, %v78_v43  ;;  %v1372_v56 = vld [vmem:[%s2691_s0 + $0xb] sm:$0x1]   ;;  %vm196_vm7 = vcmask 121856   ;;  %s1638_s4 = smov 115  }
   0xb   :  { %47 = vrot.lane.b32.xlu0 %v46_v22, %s1635_s11  ;;  %123 = vrot.lane.b32.xlu1 %v122_v37, %s1636_s28  ;;  %v1366_v45 = vld [vmem:[%s2691_s0 + $0x3f] sm:$0x4]   ;;  %v136_v48 = vsel %vm5_vm0, %v1365_v44, %v1364_v41  ;;  %v84_v52 = vsel %vm83_vm5, %v82_v47, %v68_v42  ;;  %v1373_v59 = vld [vmem:[%s2691_s0 + $0x2a] sm:$0x2]   ;;  %vm234_vm8 = vcmask 138240   ;;  %vm310_vm9 = vcmask 211968  }
   0xc   :  { %v1367_v46 = vld [vmem:[%s2691_s0 + $0x5e] sm:$0x8]   ;;  %v140_v53 = vsel %vm9_vm1, %v1366_v45, %v136_v48  ;;  %v1374_v60 = vld [vmem:[%s2691_s0 + $0x49] sm:$0x4]   ;;  %v173_v63 = vsel %vm5_vm0, %v1373_v59, %v1372_v56  ;;  %v1380_v7 = vld [vmem:[%s2691_s0 + $0x15] sm:$0x1]  }
   0xd   :  { %v1368_v49 = vld [vmem:[%s2691_s0 + $0x1] sm:$0x1]   ;;  %v144_v57 = vsel %vm13_vm2, %v1367_v46, %v140_v53  ;;  %v1375_v61 = vld [vmem:[%s2691_s0 + $0x68] sm:$0x8]   ;;  %v177_v4 = vsel %vm9_vm1, %v1374_v60, %v173_v63  ;;  %v1381_v10 = vld [vmem:[%s2691_s0 + $0x34] sm:$0x2]  }
   0xe   :  { %v1369_v50 = vld [vmem:[%s2691_s0 + $0x20] sm:$0x2]   ;;  %v1376_v0 = vld [vmem:[%s2691_s0 + $0xb] sm:$0x1]   ;;  %v181_v8 = vsel %vm13_vm2, %v1375_v61, %v177_v4  ;;  %v1382_v11 = vld [vmem:[%s2691_s0 + $0x53] sm:$0x4]   ;;  %v211_v14 = vsel %vm5_vm0, %v1381_v10, %v1380_v7 }
   0xf   :  { %v1370_v51 = vld [vmem:[%s2691_s0 + $0x3f] sm:$0x4]   ;;  %v150_v54 = vsel %vm5_vm0, %v1369_v50, %v1368_v49  ;;  %85 = vrot.lane.b32.xlu0 %v84_v52, %s1637_s16  ;;  %v1377_v1 = vld [vmem:[%s2691_s0 + $0x2a] sm:$0x2]   ;;  %v1383_v12 = vld [vmem:[%s2691_s0 + $0x72] sm:$0x8]   ;;  %v215_v19 = vsel %vm9_vm1, %v1382_v11, %v211_v14 }
  0x10   :  { %v1371_v55 = vld [vmem:[%s2691_s0 + $0x5e] sm:$0x8]   ;;  %v154_v58 = vsel %vm9_vm1, %v1370_v51, %v150_v54  ;;  %v1378_v2 = vld [vmem:[%s2691_s0 + $0x49] sm:$0x4]   ;;  %v187_v5 = vsel %vm5_vm0, %v1377_v1, %v1376_v0  ;;  %v1384_v15 = vld [vmem:[%s2691_s0 + $0x15] sm:$0x1]   ;;  %v219_v23 = vsel %vm13_vm2, %v1383_v12, %v215_v19 }
  0x11   :  { %v158_v62 = vsel %vm13_vm2, %v1371_v55, %v154_v58  ;;  %v1379_v6 = vld [vmem:[%s2691_s0 + $0x68] sm:$0x8]   ;;  %v191_v9 = vsel %vm9_vm1, %v1378_v2, %v187_v5  ;;  %v1385_v16 = vld [vmem:[%s2691_s0 + $0x34] sm:$0x2]   ;;  %v1396_v22 = vld [vmem:[%s2691_s0 + $0x2] sm:$0x1]  }
  0x12   :  { %v160_v3 = vsel %vm159_vm6, %v158_v62, %v144_v57  ;;  %v195_v13 = vsel %vm13_vm2, %v1379_v6, %v191_v9  ;;  %v1386_v17 = vld [vmem:[%s2691_s0 + $0x53] sm:$0x4]   ;;  %v225_v20 = vsel %vm5_vm0, %v1385_v16, %v1384_v15  ;;  %s1639_s21 = smov 113   ;;  %v1397_v25 = vld [vmem:[%s2691_s0 + $0x21] sm:$0x2]   ;;  %vm348_vm10 = vcmask 228352  }
  0x13   :  { %161 = vrot.lane.b32.xlu1 %v160_v3, %s1638_s4  ;;  %v197_v18 = vsel %vm196_vm7, %v195_v13, %v181_v8  ;;  %v1387_v21 = vld [vmem:[%s2691_s0 + $0x72] sm:$0x8]   ;;  %v229_v24 = vsel %vm9_vm1, %v1386_v17, %v225_v20  ;;  %v1398_v26 = vld [vmem:[%s2691_s0 + $0x40] sm:$0x4]   ;;  %v287_v29 = vsel %vm5_vm0, %v1397_v25, %v1396_v22  ;;  %v1404_v37 = vld [vmem:[%s2691_s0 + $0xc] sm:$0x1]  }
  0x14   :  { %198 = vrot.lane.b32.xlu0 %v197_v18, %s1639_s21  ;;  %v1399_v27 = vld [vmem:[%s2691_s0 + $0x5f] sm:$0x8]   ;;  %v233_v28 = vsel %vm13_vm2, %v1387_v21, %v229_v24  ;;  %v291_v34 = vsel %vm9_vm1, %v1398_v26, %v287_v29  ;;  %s1640_s9 = smov 111   ;;  %v1405_v40 = vld [vmem:[%s2691_s0 + $0x2b] sm:$0x2]   ;;  %vm386_vm11 = vcmask 244736  }
  0x15   :  { %v1400_v30 = vld [vmem:[%s2691_s0 + $0x2] sm:$0x1]   ;;  %v235_v33 = vsel %vm234_vm8, %v233_v28, %v219_v23  ;;  %v295_v38 = vsel %vm13_vm2, %v1399_v27, %v291_v34  ;;  %v1406_v41 = vld [vmem:[%s2691_s0 + $0x4a] sm:$0x4]   ;;  %v325_v44 = vsel %vm5_vm0, %v1405_v40, %v1404_v37  ;;  %v1412_v52 = vld [vmem:[%s2691_s0 + $0x16] sm:$0x1]  }
  0x16   :  { %v1401_v31 = vld [vmem:[%s2691_s0 + $0x21] sm:$0x2]   ;;  %v1407_v42 = vld [vmem:[%s2691_s0 + $0x69] sm:$0x8]   ;;  %v329_v49 = vsel %vm9_vm1, %v1406_v41, %v325_v44  ;;  %s1641_s26 = smov 102   ;;  %vm424_vm12 = vcmask 318464  }
  0x17   :  { %v1402_v32 = vld [vmem:[%s2691_s0 + $0x40] sm:$0x4]   ;;  %v301_v35 = vsel %vm5_vm0, %v1401_v31, %v1400_v30  ;;  %236 = vrot.lane.b32.xlu1 %v235_v33, %s1640_s9  ;;  %v1408_v45 = vld [vmem:[%s2691_s0 + $0xc] sm:$0x1]   ;;  %v333_v53 = vsel %vm13_vm2, %v1407_v42, %v329_v49  ;;  %v1413_v55 = vld [vmem:[%s2691_s0 + $0x35] sm:$0x2]  }
  0x18   :  { %v1403_v36 = vld [vmem:[%s2691_s0 + $0x5f] sm:$0x8]   ;;  %v305_v39 = vsel %vm9_vm1, %v1402_v32, %v301_v35  ;;  %v1409_v46 = vld [vmem:[%s2691_s0 + $0x2b] sm:$0x2]   ;;  %v1414_v56 = vld [vmem:[%s2691_s0 + $0x54] sm:$0x4]   ;;  %v363_v59 = vsel %vm5_vm0, %v1413_v55, %v1412_v52 }
  0x19   :  { %v309_v43 = vsel %vm13_vm2, %v1403_v36, %v305_v39  ;;  %v1410_v47 = vld [vmem:[%s2691_s0 + $0x4a] sm:$0x4]   ;;  %v339_v50 = vsel %vm5_vm0, %v1409_v46, %v1408_v45  ;;  %v1415_v57 = vld [vmem:[%s2691_s0 + $0x73] sm:$0x8]   ;;  %v367_v0 = vsel %vm9_vm1, %v1414_v56, %v363_v59  ;;  %v1420_v3 = vld [vmem:[%s2691_s0 + $0x3] sm:$0x1]  }
  0x1a   :  { %v311_v48 = vsel %vm310_vm9, %v309_v43, %v295_v38  ;;  %v1411_v51 = vld [vmem:[%s2691_s0 + $0x69] sm:$0x8]   ;;  %v343_v54 = vsel %vm9_vm1, %v1410_v47, %v339_v50  ;;  %v1416_v60 = vld [vmem:[%s2691_s0 + $0x16] sm:$0x1]   ;;  %s1642_s14 = smov 100   ;;  %v371_v4 = vsel %vm13_vm2, %v1415_v57, %v367_v0  ;;  %vm462_vm13 = vcmask 334848  }
  0x1b   :  { %312 = vrot.lane.b32.xlu0 %v311_v48, %s1641_s26  ;;  %v347_v58 = vsel %vm13_vm2, %v1411_v51, %v343_v54  ;;  %v1417_v61 = vld [vmem:[%s2691_s0 + $0x35] sm:$0x2]   ;;  %v1421_v6 = vld [vmem:[%s2691_s0 + $0x22] sm:$0x2]   ;;  %v1428_v18 = vld [vmem:[%s2691_s0 + $0xd] sm:$0x1]  }
  0x1c   :  { %v1418_v62 = vld [vmem:[%s2691_s0 + $0x54] sm:$0x4]   ;;  %v349_v63 = vsel %vm348_vm10, %v347_v58, %v333_v53  ;;  %v377_v1 = vsel %vm5_vm0, %v1417_v61, %v1416_v60  ;;  %v1422_v7 = vld [vmem:[%s2691_s0 + $0x41] sm:$0x4]   ;;  %v401_v10 = vsel %vm5_vm0, %v1421_v6, %v1420_v3  ;;  %s1643_s2 = smov 98   ;;  %vm500_vm14 = vcmask 351232  }
  0x1d   :  { %v1419_v2 = vld [vmem:[%s2691_s0 + $0x73] sm:$0x8]   ;;  %350 = vrot.lane.b32.xlu1 %v349_v63, %s1642_s14  ;;  %v381_v5 = vsel %vm9_vm1, %v1418_v62, %v377_v1  ;;  %v1423_v8 = vld [vmem:[%s2691_s0 + $0x60] sm:$0x8]   ;;  %v405_v15 = vsel %vm9_vm1, %v1422_v7, %v401_v10  ;;  %v1429_v21 = vld [vmem:[%s2691_s0 + $0x2c] sm:$0x2]  }
  0x1e   :  { %v385_v9 = vsel %vm13_vm2, %v1419_v2, %v381_v5  ;;  %v1424_v11 = vld [vmem:[%s2691_s0 + $0x3] sm:$0x1]   ;;  %v409_v19 = vsel %vm13_vm2, %v1423_v8, %v405_v15  ;;  %v1430_v22 = vld [vmem:[%s2691_s0 + $0x4b] sm:$0x4]   ;;  %v439_v25 = vsel %vm5_vm0, %v1429_v21, %v1428_v18  ;;  %v1436_v33 = vld [vmem:[%s2691_s0 + $0x17] sm:$0x1]  }
  0x1f   :  { %v1425_v12 = vld [vmem:[%s2691_s0 + $0x22] sm:$0x2]   ;;  %v387_v14 = vsel %vm386_vm11, %v385_v9, %v371_v4  ;;  %v1431_v23 = vld [vmem:[%s2691_s0 + $0x6a] sm:$0x8]   ;;  %v443_v30 = vsel %vm9_vm1, %v1430_v22, %v439_v25  ;;  %s1644_s19 = smov 89   ;;  %vm538_vm15 = vcmask 424960  }
  0x20   :  { %v1426_v13 = vld [vmem:[%s2691_s0 + $0x41] sm:$0x4]   ;;  %v415_v16 = vsel %vm5_vm0, %v1425_v12, %v1424_v11  ;;  %388 = vrot.lane.b32.xlu0 %v387_v14, %s1643_s2  ;;  %v1432_v26 = vld [vmem:[%s2691_s0 + $0xd] sm:$0x1]   ;;  %v447_v34 = vsel %vm13_vm2, %v1431_v23, %v443_v30  ;;  %v1437_v36 = vld [vmem:[%s2691_s0 + $0x36] sm:$0x2]  }
  0x21   :  { %v1427_v17 = vld [vmem:[%s2691_s0 + $0x60] sm:$0x8]   ;;  %v419_v20 = vsel %vm9_vm1, %v1426_v13, %v415_v16  ;;  %v1433_v27 = vld [vmem:[%s2691_s0 + $0x2c] sm:$0x2]   ;;  %v1438_v37 = vld [vmem:[%s2691_s0 + $0x55] sm:$0x4]   ;;  %v477_v40 = vsel %vm5_vm0, %v1437_v36, %v1436_v33 }
  0x22   :  { %v423_v24 = vsel %vm13_vm2, %v1427_v17, %v419_v20  ;;  %v1434_v28 = vld [vmem:[%s2691_s0 + $0x4b] sm:$0x4]   ;;  %v453_v31 = vsel %vm5_vm0, %v1433_v27, %v1432_v26  ;;  %v1439_v38 = vld [vmem:[%s2691_s0 + $0x74] sm:$0x8]   ;;  %v481_v45 = vsel %vm9_vm1, %v1438_v37, %v477_v40  ;;  %v1444_v48 = vld [vmem:[%s2691_s0 + $0x4] sm:$0x1]  }
  0x23   :  { %v425_v29 = vsel %vm424_vm12, %v423_v24, %v409_v19  ;;  %v1435_v32 = vld [vmem:[%s2691_s0 + $0x6a] sm:$0x8]   ;;  %v457_v35 = vsel %vm9_vm1, %v1434_v28, %v453_v31  ;;  %v1440_v41 = vld [vmem:[%s2691_s0 + $0x17] sm:$0x1]   ;;  %s1645_s7 = smov 87   ;;  %v485_v49 = vsel %vm13_vm2, %v1439_v38, %v481_v45  ;;  %vm576_vm3 = vcmask 441344  }
  0x24   :  { %426 = vrot.lane.b32.xlu1 %v425_v29, %s1644_s19  ;;  %v461_v39 = vsel %vm13_vm2, %v1435_v32, %v457_v35  ;;  %v1441_v42 = vld [vmem:[%s2691_s0 + $0x36] sm:$0x2]   ;;  %v1445_v51 = vld [vmem:[%s2691_s0 + $0x23] sm:$0x2]   ;;  %v1452_v63 = vld [vmem:[%s2691_s0 + $0xe] sm:$0x1]  }
  0x25   :  { %v1442_v43 = vld [vmem:[%s2691_s0 + $0x55] sm:$0x4]   ;;  %v463_v44 = vsel %vm462_vm13, %v461_v39, %v447_v34  ;;  %v491_v46 = vsel %vm5_vm0, %v1441_v42, %v1440_v41  ;;  %v1446_v52 = vld [vmem:[%s2691_s0 + $0x42] sm:$0x4]   ;;  %v515_v55 = vsel %vm5_vm0, %v1445_v51, %v1444_v48  ;;  %s1646_s24 = smov 85   ;;  %vm614_vm4 = vcmask 457728  }
  0x26   :  { %v1443_v47 = vld [vmem:[%s2691_s0 + $0x74] sm:$0x8]   ;;  %464 = vrot.lane.b32.xlu0 %v463_v44, %s1645_s7  ;;  %v495_v50 = vsel %vm9_vm1, %v1442_v43, %v491_v46  ;;  %v1447_v53 = vld [vmem:[%s2691_s0 + $0x61] sm:$0x8]   ;;  %v519_v60 = vsel %vm9_vm1, %v1446_v52, %v515_v55  ;;  %v1453_v2 = vld [vmem:[%s2691_s0 + $0x2d] sm:$0x2]  }
  0x27   :  { %v499_v54 = vsel %vm13_vm2, %v1443_v47, %v495_v50  ;;  %v1448_v56 = vld [vmem:[%s2691_s0 + $0x4] sm:$0x1]   ;;  %v523_v0 = vsel %vm13_vm2, %v1447_v53, %v519_v60  ;;  %v1454_v3 = vld [vmem:[%s2691_s0 + $0x4c] sm:$0x4]   ;;  %v553_v6 = vsel %vm5_vm0, %v1453_v2, %v1452_v63  ;;  %v1460_v14 = vld [vmem:[%s2691_s0 + $0x18] sm:$0x1]  }
  0x28   :  { %v1449_v57 = vld [vmem:[%s2691_s0 + $0x23] sm:$0x2]   ;;  %v501_v59 = vsel %vm500_vm14, %v499_v54, %v485_v49  ;;  %v1455_v4 = vld [vmem:[%s2691_s0 + $0x6b] sm:$0x8]   ;;  %v557_v11 = vsel %vm9_vm1, %v1454_v3, %v553_v6  ;;  %s1647_s12 = smov 76   ;;  %vm652_vm5 = vcmask 531456  }
  0x29   :  { %v1450_v58 = vld [vmem:[%s2691_s0 + $0x42] sm:$0x4]   ;;  %v529_v61 = vsel %vm5_vm0, %v1449_v57, %v1448_v56  ;;  %502 = vrot.lane.b32.xlu1 %v501_v59, %s1646_s24  ;;  %v1456_v7 = vld [vmem:[%s2691_s0 + $0xe] sm:$0x1]   ;;  %v561_v15 = vsel %vm13_vm2, %v1455_v4, %v557_v11  ;;  %v1461_v17 = vld [vmem:[%s2691_s0 + $0x37] sm:$0x2]  }
  0x2a   :  { %v1451_v62 = vld [vmem:[%s2691_s0 + $0x61] sm:$0x8]   ;;  %v533_v1 = vsel %vm9_vm1, %v1450_v58, %v529_v61  ;;  %v1457_v8 = vld [vmem:[%s2691_s0 + $0x2d] sm:$0x2]   ;;  %v1462_v18 = vld [vmem:[%s2691_s0 + $0x56] sm:$0x4]   ;;  %v591_v21 = vsel %vm5_vm0, %v1461_v17, %v1460_v14 }
  0x2b   :  { %v537_v5 = vsel %vm13_vm2, %v1451_v62, %v533_v1  ;;  %v1458_v9 = vld [vmem:[%s2691_s0 + $0x4c] sm:$0x4]   ;;  %v567_v12 = vsel %vm5_vm0, %v1457_v8, %v1456_v7  ;;  %v1463_v19 = vld [vmem:[%s2691_s0 + $0x75] sm:$0x8]   ;;  %v595_v26 = vsel %vm9_vm1, %v1462_v18, %v591_v21  ;;  %v1468_v29 = vld [vmem:[%s2691_s0 + $0x5] sm:$0x1]  }
  0x2c   :  { %v539_v10 = vsel %vm538_vm15, %v537_v5, %v523_v0  ;;  %v1459_v13 = vld [vmem:[%s2691_s0 + $0x6b] sm:$0x8]   ;;  %v571_v16 = vsel %vm9_vm1, %v1458_v9, %v567_v12  ;;  %v1464_v22 = vld [vmem:[%s2691_s0 + $0x18] sm:$0x1]   ;;  %s1648_s29 = smov 74   ;;  %v599_v30 = vsel %vm13_vm2, %v1463_v19, %v595_v26  ;;  %vm690_vm6 = vcmask 547840  }
  0x2d   :  { %540 = vrot.lane.b32.xlu0 %v539_v10, %s1647_s12  ;;  %v575_v20 = vsel %vm13_vm2, %v1459_v13, %v571_v16  ;;  %v1465_v23 = vld [vmem:[%s2691_s0 + $0x37] sm:$0x2]   ;;  %v1469_v32 = vld [vmem:[%s2691_s0 + $0x24] sm:$0x2]   ;;  %v1476_v44 = vld [vmem:[%s2691_s0 + $0xf] sm:$0x1]  }
  0x2e   :  { %v1466_v24 = vld [vmem:[%s2691_s0 + $0x56] sm:$0x4]   ;;  %v577_v25 = vsel %vm576_vm3, %v575_v20, %v561_v15  ;;  %v605_v27 = vsel %vm5_vm0, %v1465_v23, %v1464_v22  ;;  %v1470_v33 = vld [vmem:[%s2691_s0 + $0x43] sm:$0x4]   ;;  %v629_v36 = vsel %vm5_vm0, %v1469_v32, %v1468_v29  ;;  %s1649_s17 = smov 72   ;;  %vm728_vm7 = vcmask 564224  }
  0x2f   :  { %v1467_v28 = vld [vmem:[%s2691_s0 + $0x75] sm:$0x8]   ;;  %578 = vrot.lane.b32.xlu1 %v577_v25, %s1648_s29  ;;  %v609_v31 = vsel %vm9_vm1, %v1466_v24, %v605_v27  ;;  %v1471_v34 = vld [vmem:[%s2691_s0 + $0x62] sm:$0x8]   ;;  %v633_v41 = vsel %vm9_vm1, %v1470_v33, %v629_v36  ;;  %v1477_v47 = vld [vmem:[%s2691_s0 + $0x2e] sm:$0x2]  }
  0x30   :  { %v613_v35 = vsel %vm13_vm2, %v1467_v28, %v609_v31  ;;  %v1472_v37 = vld [vmem:[%s2691_s0 + $0x5] sm:$0x1]   ;;  %v637_v45 = vsel %vm13_vm2, %v1471_v34, %v633_v41  ;;  %v1478_v48 = vld [vmem:[%s2691_s0 + $0x4d] sm:$0x4]   ;;  %v667_v51 = vsel %vm5_vm0, %v1477_v47, %v1476_v44  ;;  %v1484_v59 = vld [vmem:[%s2691_s0 + $0x19] sm:$0x1]  }
  0x31   :  { %v1473_v38 = vld [vmem:[%s2691_s0 + $0x24] sm:$0x2]   ;;  %v615_v40 = vsel %vm614_vm4, %v613_v35, %v599_v30  ;;  %v1479_v49 = vld [vmem:[%s2691_s0 + $0x6c] sm:$0x8]   ;;  %v671_v56 = vsel %vm9_vm1, %v1478_v48, %v667_v51  ;;  %s1650_s5 = smov 63   ;;  %vm766_vm8 = vcmask 637952  }
  0x32   :  { %v1474_v39 = vld [vmem:[%s2691_s0 + $0x43] sm:$0x4]   ;;  %v643_v42 = vsel %vm5_vm0, %v1473_v38, %v1472_v37  ;;  %616 = vrot.lane.b32.xlu0 %v615_v40, %s1649_s17  ;;  %v1480_v52 = vld [vmem:[%s2691_s0 + $0xf] sm:$0x1]   ;;  %v675_v60 = vsel %vm13_vm2, %v1479_v49, %v671_v56  ;;  %v1485_v62 = vld [vmem:[%s2691_s0 + $0x38] sm:$0x2]  }
  0x33   :  { %v1475_v43 = vld [vmem:[%s2691_s0 + $0x62] sm:$0x8]   ;;  %v647_v46 = vsel %vm9_vm1, %v1474_v39, %v643_v42  ;;  %v1481_v53 = vld [vmem:[%s2691_s0 + $0x2e] sm:$0x2]   ;;  %v1486_v63 = vld [vmem:[%s2691_s0 + $0x57] sm:$0x4]   ;;  %v705_v2 = vsel %vm5_vm0, %v1485_v62, %v1484_v59 }
  0x34   :  { %v651_v50 = vsel %vm13_vm2, %v1475_v43, %v647_v46  ;;  %v1482_v54 = vld [vmem:[%s2691_s0 + $0x4d] sm:$0x4]   ;;  %v681_v57 = vsel %vm5_vm0, %v1481_v53, %v1480_v52  ;;  %v1487_v0 = vld [vmem:[%s2691_s0 + $0x76] sm:$0x8]   ;;  %v709_v7 = vsel %vm9_vm1, %v1486_v63, %v705_v2  ;;  %v1492_v10 = vld [vmem:[%s2691_s0 + $0x6] sm:$0x1]  }
  0x35   :  { %v653_v55 = vsel %vm652_vm5, %v651_v50, %v637_v45  ;;  %v1483_v58 = vld [vmem:[%s2691_s0 + $0x6c] sm:$0x8]   ;;  %v685_v61 = vsel %vm9_vm1, %v1482_v54, %v681_v57  ;;  %v1488_v3 = vld [vmem:[%s2691_s0 + $0x19] sm:$0x1]   ;;  %s1651_s22 = smov 61   ;;  %v713_v11 = vsel %vm13_vm2, %v1487_v0, %v709_v7  ;;  %vm804_vm9 = vcmask 654336  }
  0x36   :  { %654 = vrot.lane.b32.xlu1 %v653_v55, %s1650_s5  ;;  %v689_v1 = vsel %vm13_vm2, %v1483_v58, %v685_v61  ;;  %v1489_v4 = vld [vmem:[%s2691_s0 + $0x38] sm:$0x2]   ;;  %v1493_v13 = vld [vmem:[%s2691_s0 + $0x25] sm:$0x2]   ;;  %v1500_v25 = vld [vmem:[%s2691_s0 + $0x10] sm:$0x1]  }
  0x37   :  { %v1490_v5 = vld [vmem:[%s2691_s0 + $0x57] sm:$0x4]   ;;  %v691_v6 = vsel %vm690_vm6, %v689_v1, %v675_v60  ;;  %v719_v8 = vsel %vm5_vm0, %v1489_v4, %v1488_v3  ;;  %v1494_v14 = vld [vmem:[%s2691_s0 + $0x44] sm:$0x4]   ;;  %v743_v17 = vsel %vm5_vm0, %v1493_v13, %v1492_v10  ;;  %s1652_s10 = smov 59   ;;  %vm842_vm10 = vcmask 670720  }
  0x38   :  { %v1491_v9 = vld [vmem:[%s2691_s0 + $0x76] sm:$0x8]   ;;  %692 = vrot.lane.b32.xlu0 %v691_v6, %s1651_s22  ;;  %v723_v12 = vsel %vm9_vm1, %v1490_v5, %v719_v8  ;;  %v1495_v15 = vld [vmem:[%s2691_s0 + $0x63] sm:$0x8]   ;;  %v747_v22 = vsel %vm9_vm1, %v1494_v14, %v743_v17  ;;  %v1501_v28 = vld [vmem:[%s2691_s0 + $0x2f] sm:$0x2]  }
  0x39   :  { %v727_v16 = vsel %vm13_vm2, %v1491_v9, %v723_v12  ;;  %v1496_v18 = vld [vmem:[%s2691_s0 + $0x6] sm:$0x1]   ;;  %v751_v26 = vsel %vm13_vm2, %v1495_v15, %v747_v22  ;;  %v1502_v29 = vld [vmem:[%s2691_s0 + $0x4e] sm:$0x4]   ;;  %v781_v32 = vsel %vm5_vm0, %v1501_v28, %v1500_v25  ;;  %v1508_v40 = vld [vmem:[%s2691_s0 + $0x1a] sm:$0x1]  }
  0x3a   :  { %v1497_v19 = vld [vmem:[%s2691_s0 + $0x25] sm:$0x2]   ;;  %v729_v21 = vsel %vm728_vm7, %v727_v16, %v713_v11  ;;  %v1503_v30 = vld [vmem:[%s2691_s0 + $0x6d] sm:$0x8]   ;;  %v785_v37 = vsel %vm9_vm1, %v1502_v29, %v781_v32  ;;  %s1653_s27 = smov 50   ;;  %vm880_vm11 = vcmask 744448  }
  0x3b   :  { %v1498_v20 = vld [vmem:[%s2691_s0 + $0x44] sm:$0x4]   ;;  %v757_v23 = vsel %vm5_vm0, %v1497_v19, %v1496_v18  ;;  %730 = vrot.lane.b32.xlu1 %v729_v21, %s1652_s10  ;;  %v1504_v33 = vld [vmem:[%s2691_s0 + $0x10] sm:$0x1]   ;;  %v789_v41 = vsel %vm13_vm2, %v1503_v30, %v785_v37  ;;  %v1509_v43 = vld [vmem:[%s2691_s0 + $0x39] sm:$0x2]  }
  0x3c   :  { %v1499_v24 = vld [vmem:[%s2691_s0 + $0x63] sm:$0x8]   ;;  %v761_v27 = vsel %vm9_vm1, %v1498_v20, %v757_v23  ;;  %v1505_v34 = vld [vmem:[%s2691_s0 + $0x2f] sm:$0x2]   ;;  %v1510_v44 = vld [vmem:[%s2691_s0 + $0x58] sm:$0x4]   ;;  %v819_v47 = vsel %vm5_vm0, %v1509_v43, %v1508_v40 }
  0x3d   :  { %v765_v31 = vsel %vm13_vm2, %v1499_v24, %v761_v27  ;;  %v1506_v35 = vld [vmem:[%s2691_s0 + $0x4e] sm:$0x4]   ;;  %v795_v38 = vsel %vm5_vm0, %v1505_v34, %v1504_v33  ;;  %v1511_v45 = vld [vmem:[%s2691_s0 + $0x77] sm:$0x8]   ;;  %v823_v52 = vsel %vm9_vm1, %v1510_v44, %v819_v47  ;;  %v1516_v55 = vld [vmem:[%s2691_s0 + $0x7] sm:$0x1]  }
  0x3e   :  { %v767_v36 = vsel %vm766_vm8, %v765_v31, %v751_v26  ;;  %v1507_v39 = vld [vmem:[%s2691_s0 + $0x6d] sm:$0x8]   ;;  %v799_v42 = vsel %vm9_vm1, %v1506_v35, %v795_v38  ;;  %v1512_v48 = vld [vmem:[%s2691_s0 + $0x1a] sm:$0x1]   ;;  %s1654_s15 = smov 48   ;;  %v827_v56 = vsel %vm13_vm2, %v1511_v45, %v823_v52  ;;  %vm918_vm12 = vcmask 760832  }
  0x3f   :  { %768 = vrot.lane.b32.xlu0 %v767_v36, %s1653_s27  ;;  %v803_v46 = vsel %vm13_vm2, %v1507_v39, %v799_v42  ;;  %v1513_v49 = vld [vmem:[%s2691_s0 + $0x39] sm:$0x2]   ;;  %v1517_v58 = vld [vmem:[%s2691_s0 + $0x26] sm:$0x2]   ;;  %v1524_v6 = vld [vmem:[%s2691_s0 + $0x11] sm:$0x1]  }
  0x40   :  { %v1514_v50 = vld [vmem:[%s2691_s0 + $0x58] sm:$0x4]   ;;  %v805_v51 = vsel %vm804_vm9, %v803_v46, %v789_v41  ;;  %v833_v53 = vsel %vm5_vm0, %v1513_v49, %v1512_v48  ;;  %v1518_v59 = vld [vmem:[%s2691_s0 + $0x45] sm:$0x4]   ;;  %v857_v62 = vsel %vm5_vm0, %v1517_v58, %v1516_v55  ;;  %s1655_s3 = smov 46   ;;  %vm956_vm13 = vcmask 777216  }
  0x41   :  { %v1515_v54 = vld [vmem:[%s2691_s0 + $0x77] sm:$0x8]   ;;  %806 = vrot.lane.b32.xlu1 %v805_v51, %s1654_s15  ;;  %v837_v57 = vsel %vm9_vm1, %v1514_v50, %v833_v53  ;;  %v1519_v60 = vld [vmem:[%s2691_s0 + $0x64] sm:$0x8]   ;;  %v861_v3 = vsel %vm9_vm1, %v1518_v59, %v857_v62  ;;  %v1525_v9 = vld [vmem:[%s2691_s0 + $0x30] sm:$0x2]  }
  0x42   :  { %v841_v61 = vsel %vm13_vm2, %v1515_v54, %v837_v57  ;;  %v1520_v63 = vld [vmem:[%s2691_s0 + $0x7] sm:$0x1]   ;;  %v865_v7 = vsel %vm13_vm2, %v1519_v60, %v861_v3  ;;  %v1526_v10 = vld [vmem:[%s2691_s0 + $0x4f] sm:$0x4]   ;;  %v895_v13 = vsel %vm5_vm0, %v1525_v9, %v1524_v6  ;;  %v1532_v21 = vld [vmem:[%s2691_s0 + $0x1b] sm:$0x1]  }
  0x43   :  { %v1521_v0 = vld [vmem:[%s2691_s0 + $0x26] sm:$0x2]   ;;  %v843_v2 = vsel %vm842_vm10, %v841_v61, %v827_v56  ;;  %v1527_v11 = vld [vmem:[%s2691_s0 + $0x6e] sm:$0x8]   ;;  %v899_v18 = vsel %vm9_vm1, %v1526_v10, %v895_v13  ;;  %s1656_s20 = smov 37   ;;  %vm994_vm14 = vcmask 850944  }
  0x44   :  { %v1522_v1 = vld [vmem:[%s2691_s0 + $0x45] sm:$0x4]   ;;  %v871_v4 = vsel %vm5_vm0, %v1521_v0, %v1520_v63  ;;  %844 = vrot.lane.b32.xlu0 %v843_v2, %s1655_s3  ;;  %v1528_v14 = vld [vmem:[%s2691_s0 + $0x11] sm:$0x1]   ;;  %v903_v22 = vsel %vm13_vm2, %v1527_v11, %v899_v18  ;;  %v1533_v24 = vld [vmem:[%s2691_s0 + $0x3a] sm:$0x2]  }
  0x45   :  { %v1523_v5 = vld [vmem:[%s2691_s0 + $0x64] sm:$0x8]   ;;  %v875_v8 = vsel %vm9_vm1, %v1522_v1, %v871_v4  ;;  %v1529_v15 = vld [vmem:[%s2691_s0 + $0x30] sm:$0x2]   ;;  %v1534_v25 = vld [vmem:[%s2691_s0 + $0x59] sm:$0x4]   ;;  %v933_v28 = vsel %vm5_vm0, %v1533_v24, %v1532_v21 }
  0x46   :  { %v879_v12 = vsel %vm13_vm2, %v1523_v5, %v875_v8  ;;  %v1530_v16 = vld [vmem:[%s2691_s0 + $0x4f] sm:$0x4]   ;;  %v909_v19 = vsel %vm5_vm0, %v1529_v15, %v1528_v14  ;;  %v1535_v26 = vld [vmem:[%s2691_s0 + $0x78] sm:$0x8]   ;;  %v937_v33 = vsel %vm9_vm1, %v1534_v25, %v933_v28  ;;  %v1540_v36 = vld [vmem:[%s2691_s0 + $0x8] sm:$0x1]  }
  0x47   :  { %v881_v17 = vsel %vm880_vm11, %v879_v12, %v865_v7  ;;  %v1531_v20 = vld [vmem:[%s2691_s0 + $0x6e] sm:$0x8]   ;;  %v913_v23 = vsel %vm9_vm1, %v1530_v16, %v909_v19  ;;  %v1536_v29 = vld [vmem:[%s2691_s0 + $0x1b] sm:$0x1]   ;;  %s1657_s8 = smov 35   ;;  %v941_v37 = vsel %vm13_vm2, %v1535_v26, %v937_v33  ;;  %vm1032_vm15 = vcmask 867328  }
  0x48   :  { %882 = vrot.lane.b32.xlu1 %v881_v17, %s1656_s20  ;;  %v917_v27 = vsel %vm13_vm2, %v1531_v20, %v913_v23  ;;  %v1537_v30 = vld [vmem:[%s2691_s0 + $0x3a] sm:$0x2]   ;;  %v1541_v39 = vld [vmem:[%s2691_s0 + $0x27] sm:$0x2]   ;;  %v1548_v51 = vld [vmem:[%s2691_s0 + $0x12] sm:$0x1]  }
  0x49   :  { %v1538_v31 = vld [vmem:[%s2691_s0 + $0x59] sm:$0x4]   ;;  %v919_v32 = vsel %vm918_vm12, %v917_v27, %v903_v22  ;;  %v947_v34 = vsel %vm5_vm0, %v1537_v30, %v1536_v29  ;;  %v1542_v40 = vld [vmem:[%s2691_s0 + $0x46] sm:$0x4]   ;;  %v971_v43 = vsel %vm5_vm0, %v1541_v39, %v1540_v36  ;;  %s1658_s25 = smov 33   ;;  %vm1070_vm3 = vcmask 883712  }
  0x4a   :  { %v1539_v35 = vld [vmem:[%s2691_s0 + $0x78] sm:$0x8]   ;;  %920 = vrot.lane.b32.xlu0 %v919_v32, %s1657_s8  ;;  %v951_v38 = vsel %vm9_vm1, %v1538_v31, %v947_v34  ;;  %v1543_v41 = vld [vmem:[%s2691_s0 + $0x65] sm:$0x8]   ;;  %v975_v48 = vsel %vm9_vm1, %v1542_v40, %v971_v43  ;;  %v1549_v54 = vld [vmem:[%s2691_s0 + $0x31] sm:$0x2]  }
  0x4b   :  { %v955_v42 = vsel %vm13_vm2, %v1539_v35, %v951_v38  ;;  %v1544_v44 = vld [vmem:[%s2691_s0 + $0x8] sm:$0x1]   ;;  %v979_v52 = vsel %vm13_vm2, %v1543_v41, %v975_v48  ;;  %v1550_v55 = vld [vmem:[%s2691_s0 + $0x50] sm:$0x4]   ;;  %v1009_v58 = vsel %vm5_vm0, %v1549_v54, %v1548_v51  ;;  %v1556_v2 = vld [vmem:[%s2691_s0 + $0x1c] sm:$0x1]  }
  0x4c   :  { %v1545_v45 = vld [vmem:[%s2691_s0 + $0x27] sm:$0x2]   ;;  %v957_v47 = vsel %vm956_vm13, %v955_v42, %v941_v37  ;;  %v1551_v56 = vld [vmem:[%s2691_s0 + $0x6f] sm:$0x8]   ;;  %v1013_v63 = vsel %vm9_vm1, %v1550_v55, %v1009_v58  ;;  %s1659_s13 = smov 24   ;;  %vm272_vm4 = vcmask 154624  }
  0x4d   :  { %v1546_v46 = vld [vmem:[%s2691_s0 + $0x46] sm:$0x4]   ;;  %v985_v49 = vsel %vm5_vm0, %v1545_v45, %v1544_v44  ;;  %958 = vrot.lane.b32.xlu1 %v957_v47, %s1658_s25  ;;  %v1552_v59 = vld [vmem:[%s2691_s0 + $0x12] sm:$0x1]   ;;  %v1017_v3 = vsel %vm13_vm2, %v1551_v56, %v1013_v63  ;;  %v1557_v5 = vld [vmem:[%s2691_s0 + $0x3b] sm:$0x2]  }
  0x4e   :  { %v1547_v50 = vld [vmem:[%s2691_s0 + $0x65] sm:$0x8]   ;;  %v989_v53 = vsel %vm9_vm1, %v1546_v46, %v985_v49  ;;  %v1553_v60 = vld [vmem:[%s2691_s0 + $0x31] sm:$0x2]   ;;  %v1558_v6 = vld [vmem:[%s2691_s0 + $0x5a] sm:$0x4]   ;;  %v1047_v9 = vsel %vm5_vm0, %v1557_v5, %v1556_v2 }
  0x4f   :  { %v993_v57 = vsel %vm13_vm2, %v1547_v50, %v989_v53  ;;  %v1554_v61 = vld [vmem:[%s2691_s0 + $0x50] sm:$0x4]   ;;  %v1023_v0 = vsel %vm5_vm0, %v1553_v60, %v1552_v59  ;;  %v1559_v7 = vld [vmem:[%s2691_s0 + $0x79] sm:$0x8]   ;;  %v1051_v14 = vsel %vm9_vm1, %v1558_v6, %v1047_v9  ;;  %v1388_v17 = vld [vmem:[%s2691_s0 + $0x1f] sm:$0x1]  }
  0x50   :  { %v995_v62 = vsel %vm994_vm14, %v993_v57, %v979_v52  ;;  %v1555_v1 = vld [vmem:[%s2691_s0 + $0x6f] sm:$0x8]   ;;  %v1027_v4 = vsel %vm9_vm1, %v1554_v61, %v1023_v0  ;;  %v1560_v10 = vld [vmem:[%s2691_s0 + $0x1c] sm:$0x1]   ;;  %s1660_s30 = smov 22   ;;  %v1055_v18 = vsel %vm13_vm2, %v1559_v7, %v1051_v14  ;;  %s1661_s18 = smov 20  }
  0x51   :  { %996 = vrot.lane.b32.xlu0 %v995_v62, %s1659_s13  ;;  %v1031_v8 = vsel %vm13_vm2, %v1555_v1, %v1027_v4  ;;  %v1561_v11 = vld [vmem:[%s2691_s0 + $0x3b] sm:$0x2]   ;;  %v1389_v20 = vld [vmem:[%s2691_s0 + $0x3e] sm:$0x2]   ;;  %v1564_v32 = vld [vmem:[%s2691_s0 + $0x9] sm:$0x1]  }
  0x52   :  { %v1562_v12 = vld [vmem:[%s2691_s0 + $0x5a] sm:$0x4]   ;;  %v1033_v13 = vsel %vm1032_vm15, %v1031_v8, %v1017_v3  ;;  %v1061_v15 = vsel %vm5_vm0, %v1561_v11, %v1560_v10  ;;  %v1390_v21 = vld [vmem:[%s2691_s0 + $0x5d] sm:$0x4]   ;;  %v249_v24 = vsel %vm5_vm0, %v1389_v20, %v1388_v17  ;;  %v1565_v35 = vld [vmem:[%s2691_s0 + $0x28] sm:$0x2]  }
  0x53   :  { %v1563_v16 = vld [vmem:[%s2691_s0 + $0x79] sm:$0x8]   ;;  %1034 = vrot.lane.b32.xlu1 %v1033_v13, %s1660_s30  ;;  %v1065_v19 = vsel %vm9_vm1, %v1562_v12, %v1061_v15  ;;  %v1391_v22 = vld [vmem:[%s2691_s0 + $0x7c] sm:$0x8]   ;;  %v253_v29 = vsel %vm9_vm1, %v1390_v21, %v249_v24  ;;  %v1566_v36 = vld [vmem:[%s2691_s0 + $0x47] sm:$0x4]   ;;  %v1085_v39 = vsel %vm5_vm0, %v1565_v35, %v1564_v32 }
  0x54   :  { %v1069_v23 = vsel %vm13_vm2, %v1563_v16, %v1065_v19  ;;  %v1392_v25 = vld [vmem:[%s2691_s0 + $0x1f] sm:$0x1]   ;;  %v257_v33 = vsel %vm13_vm2, %v1391_v22, %v253_v29  ;;  %v1567_v37 = vld [vmem:[%s2691_s0 + $0x66] sm:$0x8]   ;;  %v1568_v40 = vld [vmem:[%s2691_s0 + $0x13] sm:$0x1]   ;;  %v1089_v44 = vsel %vm9_vm1, %v1566_v36, %v1085_v39 }
  0x55   :  { %v1393_v26 = vld [vmem:[%s2691_s0 + $0x3e] sm:$0x2]   ;;  %v1071_v28 = vsel %vm1070_vm3, %v1069_v23, %v1055_v18  ;;  %v1569_v41 = vld [vmem:[%s2691_s0 + $0x32] sm:$0x2]   ;;  %v1572_v47 = vld [vmem:[%s2691_s0 + $0x1d] sm:$0x1]   ;;  %v1093_v48 = vsel %vm13_vm2, %v1567_v37, %v1089_v44 }
  0x56   :  { %v1394_v27 = vld [vmem:[%s2691_s0 + $0x5d] sm:$0x4]   ;;  %v263_v30 = vsel %vm5_vm0, %v1393_v26, %v1392_v25  ;;  %1072 = vrot.lane.b32.xlu0 %v1071_v28, %s1661_s18  ;;  %v1570_v42 = vld [vmem:[%s2691_s0 + $0x51] sm:$0x4]   ;;  %v1104_v45 = vsel %vm5_vm0, %v1569_v41, %v1568_v40  ;;  %s1662_s6 = smov 109   ;;  %s1663_s13 = smov 11  }
  0x57   :  { %v1395_v31 = vld [vmem:[%s2691_s0 + $0x7c] sm:$0x8]   ;;  %v267_v34 = vsel %vm9_vm1, %v1394_v27, %v263_v30  ;;  %v1571_v46 = vld [vmem:[%s2691_s0 + $0x70] sm:$0x8]   ;;  %v1108_v49 = vsel %vm9_vm1, %v1570_v42, %v1104_v45  ;;  %v1573_v50 = vld [vmem:[%s2691_s0 + $0x3c] sm:$0x2]  }
  0x58   :  { %v271_v38 = vsel %vm13_vm2, %v1395_v31, %v267_v34  ;;  %v1574_v51 = vld [vmem:[%s2691_s0 + $0x5b] sm:$0x4]   ;;  %v1112_v53 = vsel %vm13_vm2, %v1571_v46, %v1108_v49  ;;  %v1123_v54 = vsel %vm5_vm0, %v1573_v50, %v1572_v47  ;;  %v1338_v56 = vld [vmem:[%s2691_s0 + $0x3e] sm:$0x4]   ;;  %vm15_vm5 = vcmask 941056   ;;  %s1665_s22 = smov 7  }
  0x59   :  { %v273_v43 = vsel %vm272_vm4, %v271_v38, %v257_v33  ;;  %v1575_v52 = vld [vmem:[%s2691_s0 + $0x7a] sm:$0x8]   ;;  %v1127_v55 = vsel %vm9_vm1, %v1574_v51, %v1123_v54  ;;  %v2_v57 = vld [vmem:[%s2691_s0] sm:$0x1]   ;;  %vm128_vm6 = vcmask 1048528   ;;  %vm87_vm7 = vcmask 908288  }
  0x5a   :  { %274 = vrot.lane.b32.xlu1 %v273_v43, %s1662_s6  ;;  %1094 = vrot.lane.b32.xlu0 %v1093_v48, %s1663_s13  ;;  %v1131_v58 = vsel %vm13_vm2, %v1575_v52, %v1127_v55  ;;  %v1339_v59 = vld [vmem:[%s2691_s0 + $0x5d] sm:$0x8]   ;;  %vm90_vm8 = vcmask 1048544   ;;  %vm163_vm9 = vcmask 834560   ;;  %vm166_vm10 = vcmask 1048472  }
  0x5b   :  { %v1337_v60 = vld [vmem:[%s2691_s0 + $0x1f] sm:$0x2]   ;;  %s1664_s0 = smov 9   ;;  %vm200_vm11 = vcmask 818176   ;;  %vm203_vm12 = vcmask 1048456   ;;  %vm238_vm13 = vcmask 801792  }
  0x5c   :  { %v6_v61 = vsel %vm5_vm0, %v1337_v60, %v2_v57  ;;  %vm49_vm0 = vcmask 924672   ;;  %vm241_vm14 = vcmask 1048440   ;;  %vm314_vm15 = vcmask 728064  }
  0x5d   :  { %v10_v62 = vsel %vm9_vm1, %v1338_v56, %v6_v61  ;;  %vm52_vm1 = vcmask 1048560   ;;  %vm317_vm3 = vcmask 1048368   ;;  %vm352_vm4 = vcmask 711680  }
  0x5e   :  { %1113 = vrot.lane.b32.xlu1 %v1112_v53, %s1664_s0  ;;  %1132 = vrot.lane.b32.xlu0 %v1131_v58, %s1665_s22  ;;  %v14_v63 = vsel %vm13_vm2, %v1339_v59, %v10_v62  ;;  %vm125_vm2 = vcmask 891904  }
  0x5f   :  { %16 = vst.msk [vmem:[#allocation0] sm:$0xf] %vm15_vm5, %v14_v63   ;;  %vm355_vm5 = vcmask 1048352  }
  0x7d   :  { %v48_v0 = vpop.permute.xlu0 %47   ;;  %v124_v1 = vpop.permute.xlu1 %123  }
  0x7e   :  { %51 = vst.msk [vmem:[#allocation0 + $0x48] sm:$0xf] %vm49_vm0, %v48_v0   ;;  %vm390_vm0 = vcmask 695296  }
  0x7f   :  { %54 = vst.msk [vmem:[#allocation0 + $0x40] sm:$0xf] %vm52_vm1, %v48_v0   ;;  %vm393_vm1 = vcmask 1048336  }
  0x80   :  { %127 = vst.msk [vmem:[#allocation0 + $0xd8] sm:$0xf] %vm125_vm2, %v124_v1   ;;  %vm428_vm2 = vcmask 621568  }
  0x81   :  { %130 = vst.msk [vmem:[#allocation0 + $0xd0] sm:$0xf] %vm128_vm6, %v124_v1   ;;  %v86_v2 = vpop.permute.xlu0 %85   ;;  %vm431_vm6 = vcmask 1048264  }
  0x82   :  { %89 = vst.msk [vmem:[#allocation0 + $0x90] sm:$0xf] %vm87_vm7, %v86_v2   ;;  %vm466_vm7 = vcmask 605184  }
  0x83   :  { %92 = vst.msk [vmem:[#allocation0 + $0x88] sm:$0xf] %vm90_vm8, %v86_v2   ;;  %vm469_vm8 = vcmask 1048248  }
  0x85   :  { %v162_v3 = vpop.permute.xlu1 %161  }
  0x86   :  { %165 = vst.msk [vmem:[#allocation0 + $0x8] sm:$0xf] %vm163_vm9, %v162_v3   ;;  %v199_v4 = vpop.permute.xlu0 %198   ;;  %vm504_vm9 = vcmask 588800  }
  0x87   :  { %167 = vst.msk [vmem:[#allocation0] sm:$0xf] %vm166_vm10, %v162_v3   ;;  %vm507_vm10 = vcmask 1048232  }
  0x88   :  { %202 = vst.msk [vmem:[#allocation0 + $0x50] sm:$0xf] %vm200_vm11, %v199_v4   ;;  %vm542_vm11 = vcmask 515072  }
  0x89   :  { %205 = vst.msk [vmem:[#allocation0 + $0x48] sm:$0xf] %vm203_vm12, %v199_v4   ;;  %v237_v5 = vpop.permute.xlu1 %236   ;;  %vm545_vm12 = vcmask 1048160  }
  0x8a   :  { %240 = vst.msk [vmem:[#allocation0 + $0x98] sm:$0xf] %vm238_vm13, %v237_v5   ;;  %vm580_vm13 = vcmask 498688  }
  0x8b   :  { %243 = vst.msk [vmem:[#allocation0 + $0x90] sm:$0xf] %vm241_vm14, %v237_v5   ;;  %vm583_vm14 = vcmask 1048144  }
  0x8d   :  { %v313_v7 = vpop.permute.xlu0 %312  }
  0x8e   :  { %v1140_v6 = vld [vmem:[#allocation0] sm:$0xf]  ;;  %316 = vst.msk [vmem:[#allocation0 + $0x10] sm:$0xf] %vm314_vm15, %v313_v7   ;;  %vm618_vm15 = vcmask 482304  }
  0x8f   :  { %1142 = vst [vmem:[%s2692_s1] sm:$0xf] %v1140_v6  ;;  %319 = vst.msk [vmem:[#allocation0 + $0x8] sm:$0xf] %vm317_vm3, %v313_v7   ;;  %v351_v9 = vpop.permute.xlu1 %350   ;;  %vm621_vm3 = vcmask 1048128  }
  0x90   :  { %v1191_v8 = vld [vmem:[#allocation0 + $0x48] sm:$0xf]  ;;  %354 = vst.msk [vmem:[#allocation0 + $0x58] sm:$0xf] %vm352_vm4, %v351_v9   ;;  %vm656_vm4 = vcmask 408576  }
  0x91   :  { %1584 = vst [vmem:[%s2692_s1 + $0x24] sm:$0xf] %v1191_v8  ;;  %357 = vst.msk [vmem:[#allocation0 + $0x50] sm:$0xf] %vm355_vm5, %v351_v9   ;;  %vm659_vm5 = vcmask 1048056  }
  0x92   :  { %v1245_v10 = vld [vmem:[#allocation0 + $0x90] sm:$0xf]  ;;  %v389_v11 = vpop.permute.xlu0 %388  }
  0x93   :  { %1593 = vst [vmem:[%s2692_s1 + $0x48] sm:$0xf] %v1245_v10  ;;  %392 = vst.msk [vmem:[#allocation0 + $0xa0] sm:$0xf] %vm390_vm0, %v389_v11   ;;  %vm694_vm0 = vcmask 392192  }
  0x94   :  { %395 = vst.msk [vmem:[#allocation0 + $0x98] sm:$0xf] %vm393_vm1, %v389_v11   ;;  %vm697_vm1 = vcmask 1048040  }
  0x96   :  { %v1144_v12 = vld [vmem:[#allocation0 + $0x8] sm:$0xf]  ;;  %v427_v13 = vpop.permute.xlu1 %426  }
  0x97   :  { %1576 = vst [vmem:[%s2692_s1 + $0x4] sm:$0xf] %v1144_v12  ;;  %430 = vst.msk [vmem:[#allocation0 + $0x18] sm:$0xf] %vm428_vm2, %v427_v13   ;;  %vm732_vm2 = vcmask 375808  }
  0x98   :  { %433 = vst.msk [vmem:[#allocation0 + $0x10] sm:$0xf] %vm431_vm6, %v427_v13   ;;  %v1197_v14 = vld [vmem:[#allocation0 + $0x50] sm:$0xf]  ;;  %v465_v15 = vpop.permute.xlu0 %464   ;;  %vm735_vm6 = vcmask 1048024  }
  0x99   :  { %1585 = vst [vmem:[%s2692_s1 + $0x28] sm:$0xf] %v1197_v14  ;;  %468 = vst.msk [vmem:[#allocation0 + $0x60] sm:$0xf] %vm466_vm7, %v465_v15   ;;  %vm770_vm7 = vcmask 302080  }
  0x9a   :  { %471 = vst.msk [vmem:[#allocation0 + $0x58] sm:$0xf] %vm469_vm8, %v465_v15   ;;  %vm773_vm8 = vcmask 1047952  }
  0x9b   :  { %v1251_v16 = vld [vmem:[#allocation0 + $0x98] sm:$0xf]  ;;  %v503_v17 = vpop.permute.xlu1 %502  }
  0x9c   :  { %1594 = vst [vmem:[%s2692_s1 + $0x4c] sm:$0xf] %v1251_v16  ;;  %506 = vst.msk [vmem:[#allocation0 + $0xa8] sm:$0xf] %vm504_vm9, %v503_v17   ;;  %vm808_vm9 = vcmask 285696  }
  0x9d   :  { %509 = vst.msk [vmem:[#allocation0 + $0xa0] sm:$0xf] %vm507_vm10, %v503_v17   ;;  %vm811_vm10 = vcmask 1047936  }
  0x9f   :  { %v1149_v18 = vld [vmem:[#allocation0 + $0x10] sm:$0xf]  ;;  %v541_v19 = vpop.permute.xlu0 %540  }
  0xa0   :  { %1577 = vst [vmem:[%s2692_s1 + $0x8] sm:$0xf] %v1149_v18  ;;  %544 = vst.msk [vmem:[#allocation0 + $0x20] sm:$0xf] %vm542_vm11, %v541_v19   ;;  %vm846_vm11 = vcmask 269312  }
  0xa1   :  { %547 = vst.msk [vmem:[#allocation0 + $0x18] sm:$0xf] %vm545_vm12, %v541_v19   ;;  %v1203_v20 = vld [vmem:[#allocation0 + $0x58] sm:$0xf]  ;;  %v579_v21 = vpop.permute.xlu1 %578   ;;  %vm849_vm12 = vcmask 1047920  }
  0xa2   :  { %1586 = vst [vmem:[%s2692_s1 + $0x2c] sm:$0xf] %v1203_v20  ;;  %582 = vst.msk [vmem:[#allocation0 + $0x68] sm:$0xf] %vm580_vm13, %v579_v21   ;;  %vm884_vm13 = vcmask 195584  }
  0xa3   :  { %585 = vst.msk [vmem:[#allocation0 + $0x60] sm:$0xf] %vm583_vm14, %v579_v21   ;;  %vm887_vm14 = vcmask 1047848  }
  0xa4   :  { %v1257_v22 = vld [vmem:[#allocation0 + $0xa0] sm:$0xf]  ;;  %v617_v23 = vpop.permute.xlu0 %616  }
  0xa5   :  { %1595 = vst [vmem:[%s2692_s1 + $0x50] sm:$0xf] %v1257_v22  ;;  %620 = vst.msk [vmem:[#allocation0 + $0xb0] sm:$0xf] %vm618_vm15, %v617_v23   ;;  %vm922_vm15 = vcmask 179200  }
  0xa6   :  { %623 = vst.msk [vmem:[#allocation0 + $0xa8] sm:$0xf] %vm621_vm3, %v617_v23   ;;  %vm925_vm3 = vcmask 1047832  }
  0xa8   :  { %v1155_v24 = vld [vmem:[#allocation0 + $0x18] sm:$0xf]  ;;  %v655_v25 = vpop.permute.xlu1 %654  }
  0xa9   :  { %1578 = vst [vmem:[%s2692_s1 + $0xc] sm:$0xf] %v1155_v24  ;;  %658 = vst.msk [vmem:[#allocation0 + $0x28] sm:$0xf] %vm656_vm4, %v655_v25   ;;  %vm960_vm4 = vcmask 162816  }
  0xaa   :  { %661 = vst.msk [vmem:[#allocation0 + $0x20] sm:$0xf] %vm659_vm5, %v655_v25   ;;  %v1209_v26 = vld [vmem:[#allocation0 + $0x60] sm:$0xf]  ;;  %v693_v27 = vpop.permute.xlu0 %692   ;;  %vm963_vm5 = vcmask 1047816  }
  0xab   :  { %1587 = vst [vmem:[%s2692_s1 + $0x30] sm:$0xf] %v1209_v26  ;;  %696 = vst.msk [vmem:[#allocation0 + $0x70] sm:$0xf] %vm694_vm0, %v693_v27   ;;  %vm998_vm0 = vcmask 89088  }
  0xac   :  { %699 = vst.msk [vmem:[#allocation0 + $0x68] sm:$0xf] %vm697_vm1, %v693_v27   ;;  %vm1001_vm1 = vcmask 1047744  }
  0xad   :  { %v1263_v28 = vld [vmem:[#allocation0 + $0xa8] sm:$0xf]  ;;  %v731_v29 = vpop.permute.xlu1 %730  }
  0xae   :  { %1596 = vst [vmem:[%s2692_s1 + $0x54] sm:$0xf] %v1263_v28  ;;  %734 = vst.msk [vmem:[#allocation0 + $0xb8] sm:$0xf] %vm732_vm2, %v731_v29   ;;  %vm1036_vm2 = vcmask 72704  }
  0xaf   :  { %737 = vst.msk [vmem:[#allocation0 + $0xb0] sm:$0xf] %vm735_vm6, %v731_v29   ;;  %vm1039_vm6 = vcmask 1047728  }
  0xb1   :  { %v1161_v30 = vld [vmem:[#allocation0 + $0x20] sm:$0xf]  ;;  %v769_v31 = vpop.permute.xlu0 %768  }
  0xb2   :  { %1579 = vst [vmem:[%s2692_s1 + $0x10] sm:$0xf] %v1161_v30  ;;  %772 = vst.msk [vmem:[#allocation0 + $0x30] sm:$0xf] %vm770_vm7, %v769_v31   ;;  %vm1074_vm7 = vcmask 56320  }
  0xb3   :  { %775 = vst.msk [vmem:[#allocation0 + $0x28] sm:$0xf] %vm773_vm8, %v769_v31   ;;  %v1215_v32 = vld [vmem:[#allocation0 + $0x68] sm:$0xf]  ;;  %v807_v33 = vpop.permute.xlu1 %806   ;;  %vm1077_vm8 = vcmask 1047712  }
  0xb4   :  { %1588 = vst [vmem:[%s2692_s1 + $0x34] sm:$0xf] %v1215_v32  ;;  %810 = vst.msk [vmem:[#allocation0 + $0x78] sm:$0xf] %vm808_vm9, %v807_v33   ;;  %vm276_vm9 = vcmask 785408  }
  0xb5   :  { %813 = vst.msk [vmem:[#allocation0 + $0x70] sm:$0xf] %vm811_vm10, %v807_v33   ;;  %vm279_vm10 = vcmask 1048424  }
  0xb6   :  { %v1269_v34 = vld [vmem:[#allocation0 + $0xb0] sm:$0xf]  ;;  %v845_v35 = vpop.permute.xlu0 %844  }
  0xb7   :  { %1597 = vst [vmem:[%s2692_s1 + $0x58] sm:$0xf] %v1269_v34  ;;  %848 = vst.msk [vmem:[#allocation0 + $0xc0] sm:$0xf] %vm846_vm11, %v845_v35   ;;  %vm1096_vm11 = vcmask 1031256  }
  0xb8   :  { %851 = vst.msk [vmem:[#allocation0 + $0xb8] sm:$0xf] %vm849_vm12, %v845_v35   ;;  %vm1115_vm12 = vcmask 1014856  }
  0xba   :  { %v1167_v36 = vld [vmem:[#allocation0 + $0x28] sm:$0xf]  ;;  %v883_v37 = vpop.permute.xlu1 %882  }
  0xbb   :  { %1580 = vst [vmem:[%s2692_s1 + $0x14] sm:$0xf] %v1167_v36  ;;  %886 = vst.msk [vmem:[#allocation0 + $0x38] sm:$0xf] %vm884_vm13, %v883_v37   ;;  %vm1134_vm13 = vcmask 998456  }
  0xbc   :  { %889 = vst.msk [vmem:[#allocation0 + $0x30] sm:$0xf] %vm887_vm14, %v883_v37   ;;  %v1221_v38 = vld [vmem:[#allocation0 + $0x70] sm:$0xf]  ;;  %v921_v39 = vpop.permute.xlu0 %920  }
  0xbd   :  { %1589 = vst [vmem:[%s2692_s1 + $0x38] sm:$0xf] %v1221_v38  ;;  %924 = vst.msk [vmem:[#allocation0 + $0x80] sm:$0xf] %vm922_vm15, %v921_v39  }
  0xbe   :  { %927 = vst.msk [vmem:[#allocation0 + $0x78] sm:$0xf] %vm925_vm3, %v921_v39  }
  0xbf   :  { %v1275_v40 = vld [vmem:[#allocation0 + $0xb8] sm:$0xf]  ;;  %v959_v41 = vpop.permute.xlu1 %958  }
  0xc0   :  { %1598 = vst [vmem:[%s2692_s1 + $0x5c] sm:$0xf] %v1275_v40  ;;  %962 = vst.msk [vmem:[#allocation0 + $0xc8] sm:$0xf] %vm960_vm4, %v959_v41  }
  0xc1   :  { %965 = vst.msk [vmem:[#allocation0 + $0xc0] sm:$0xf] %vm963_vm5, %v959_v41  }
  0xc3   :  { %v1173_v42 = vld [vmem:[#allocation0 + $0x30] sm:$0xf]  ;;  %v997_v43 = vpop.permute.xlu0 %996  }
  0xc4   :  { %1581 = vst [vmem:[%s2692_s1 + $0x18] sm:$0xf] %v1173_v42  ;;  %1000 = vst.msk [vmem:[#allocation0 + $0x40] sm:$0xf] %vm998_vm0, %v997_v43  }
  0xc5   :  { %1003 = vst.msk [vmem:[#allocation0 + $0x38] sm:$0xf] %vm1001_vm1, %v997_v43   ;;  %v1227_v44 = vld [vmem:[#allocation0 + $0x78] sm:$0xf]  ;;  %v1035_v45 = vpop.permute.xlu1 %1034  }
  0xc6   :  { %1590 = vst [vmem:[%s2692_s1 + $0x3c] sm:$0xf] %v1227_v44  ;;  %1038 = vst.msk [vmem:[#allocation0 + $0x88] sm:$0xf] %vm1036_vm2, %v1035_v45  }
  0xc7   :  { %1041 = vst.msk [vmem:[#allocation0 + $0x80] sm:$0xf] %vm1039_vm6, %v1035_v45  }
  0xc8   :  { %v1281_v46 = vld [vmem:[#allocation0 + $0xc0] sm:$0xf]  ;;  %v1073_v47 = vpop.permute.xlu0 %1072  }
  0xc9   :  { %1599 = vst [vmem:[%s2692_s1 + $0x60] sm:$0xf] %v1281_v46  ;;  %1076 = vst.msk [vmem:[#allocation0 + $0xd0] sm:$0xf] %vm1074_vm7, %v1073_v47  }
  0xca   :  { %1079 = vst.msk [vmem:[#allocation0 + $0xc8] sm:$0xf] %vm1077_vm8, %v1073_v47  }
  0xcc   :  { %v1179_v48 = vld [vmem:[#allocation0 + $0x38] sm:$0xf]  ;;  %v275_v49 = vpop.permute.xlu1 %274   ;;  %v1095_v50 = vpop.permute.xlu0 %1094  }
  0xcd   :  { %1582 = vst [vmem:[%s2692_s1 + $0x1c] sm:$0xf] %v1179_v48  ;;  %278 = vst.msk [vmem:[#allocation0 + $0xe0] sm:$0xf] %vm276_vm9, %v275_v49  }
  0xce   :  { %281 = vst.msk [vmem:[#allocation0 + $0xd8] sm:$0xf] %vm279_vm10, %v275_v49   ;;  %v1233_v51 = vld [vmem:[#allocation0 + $0x80] sm:$0xf] }
  0xcf   :  { %1098 = vst.msk [vmem:[#allocation0 + $0x40] sm:$0xf] %vm1096_vm11, %v1095_v50   ;;  %1591 = vst [vmem:[%s2692_s1 + $0x40] sm:$0xf] %v1233_v51 }
  0xd0   :  { %v1114_v52 = vpop.permute.xlu1 %1113   ;;  %v1133_v54 = vpop.permute.xlu0 %1132  }
  0xd1   :  { %v1287_v53 = vld [vmem:[#allocation0 + $0xc8] sm:$0xf]  ;;  %1117 = vst.msk [vmem:[#allocation0 + $0x88] sm:$0xf] %vm1115_vm12, %v1114_v52  }
  0xd2   :  { %1600 = vst [vmem:[%s2692_s1 + $0x64] sm:$0xf] %v1287_v53  ;;  %1136 = vst.msk [vmem:[#allocation0 + $0xd0] sm:$0xf] %vm1134_vm13, %v1133_v54  }
  0xd4   :  { %v1305_v56 = vld [vmem:[#allocation0 + $0xe0] sm:$0xf] }
  0xd5   :  { %v1299_v55 = vld [vmem:[#allocation0 + $0xd8] sm:$0xf]  ;;  %1603 = vst [vmem:[%s2692_s1 + $0x70] sm:$0xf] %v1305_v56 }
  0xd6   :  { %1602 = vst [vmem:[%s2692_s1 + $0x6c] sm:$0xf] %v1299_v55  ;;  %v1185_v57 = vld [vmem:[#allocation0 + $0x40] sm:$0xf] }
  0xd7   :  { %1583 = vst [vmem:[%s2692_s1 + $0x20] sm:$0xf] %v1185_v57 }
  0xd8   :  { %v1239_v58 = vld [vmem:[#allocation0 + $0x88] sm:$0xf] }
  0xd9   :  { %1592 = vst [vmem:[%s2692_s1 + $0x44] sm:$0xf] %v1239_v58  ;;  %v1293_v59 = vld [vmem:[#allocation0 + $0xd0] sm:$0xf] }
  0xda   :  { %1601 = vst [vmem:[%s2692_s1 + $0x68] sm:$0xf] %v1293_v59 }

</bundles_post_ra>
